<compile_context>
chip_gen: v7x
topology: tpu7x:2x2x1
jax: 0.10.0
libtpu: 0.0.40
codegen_flags: <defaults>
</compile_context>

<pallas_src>
import functools

import jax
import jax.numpy as jnp
from jax.experimental import pallas as pl
from jax.experimental.pallas import tpu as pltpu

# ----- small DistilBERT-like config -----
VOCAB = 100
MAX_POS = 32
HIDDEN = 64          # stands in for N_UNITS_BERT_OUT = 768
N_HEADS = 2
HEAD_DIM = HIDDEN // N_HEADS
FFN = 128
N_LAYERS = 2
NUM_CLASSES = 4
LN_EPS = 1e-12

_VMEM = pl.BlockSpec(memory_space=pltpu.MemorySpace.VMEM)


# ---------------- in-kernel helpers ----------------
def _layer_norm(x, g, b):
    mu = jnp.mean(x, axis=-1, keepdims=True)
    var = jnp.mean(jnp.square(x - mu), axis=-1, keepdims=True)
    return (x - mu) * jax.lax.rsqrt(var + LN_EPS) * g + b


# ---------------- single fused kernel: embeddings + encoder + head + CE loss ----------------
def _model_kernel(ids_ref, mask_ref, tgt_ref,
                  wemb_ref, pemb_ref, eg_ref, eb_ref,
                  wqkv_ref, bqkv_ref, wo_ref, bo_ref,
                  ln1g_ref, ln1b_ref, w1_ref, b1_ref, w2_ref, b2_ref,
                  ln2g_ref, ln2b_ref,
                  wp_ref, bp_ref, wc_ref, bc_ref,
                  loss_ref, *, batch, seq):
    m_tokens = batch * seq

    # ---- embeddings (word one-hot matmul + static positional slab), all in VMEM ----
    # TODO(synk): at real vocab size (30522) replace the one-hot matmul with an XLA-side
    # gather or an in-kernel DMA gather; here VOCAB=100 so one tiny MXU pass is cheapest.
    ids = ids_ref[...]                                                      # [B*S, 1] int32
    word_oh = (jax.lax.broadcasted_iota(jnp.int32, (m_tokens, VOCAB), 1)
               == ids).astype(jnp.float32)                                  # [B*S, VOCAB]
    x = jnp.dot(word_oh, wemb_ref[...], preferred_element_type=jnp.float32)  # [B*S, H]
    pos_slab = pemb_ref[0:seq, :]                                           # [S, H] static slice
    x = x + jnp.concatenate([pos_slab] * batch, axis=0)                     # tile over batch
    x = _layer_norm(x, eg_ref[...], eb_ref[...])

    # additive attention-mask bias built in-kernel from the compact [B, S] mask
    bias = ((1.0 - mask_ref[...]) * -1e9)[:, None, :]                       # [B, 1, S]
    scale = 1.0 / (HEAD_DIM ** 0.5)

    for l in range(N_LAYERS):                                               # static unroll (L=2)
        # ---- self-attention: fused QKV matmul, per-head softmax, single O-proj matmul ----
        # bf16 cast of dot operands (keeping f32 accumulate + f32 LN/softmax) would go here
        # when scaling to real dims; neutral at this toy size.
        qkv = jnp.dot(x, wqkv_ref[l],
                      preferred_element_type=jnp.float32) + bqkv_ref[l]     # [B*S, 3H]
        ctx_heads = []
        for h in range(N_HEADS):                                            # static unroll (NH=2)
            q = qkv[:, h * HEAD_DIM:(h + 1) * HEAD_DIM]
            k = qkv[:, HIDDEN + h * HEAD_DIM:HIDDEN + (h + 1) * HEAD_DIM]
            v = qkv[:, 2 * HIDDEN + h * HEAD_DIM:2 * HIDDEN + (h + 1) * HEAD_DIM]
            q = q.reshape(batch, seq, HEAD_DIM)
            k = k.reshape(batch, seq, HEAD_DIM)
            v = v.reshape(batch, seq, HEAD_DIM)
            s = jnp.einsum("bqd,bkd->bqk", q, k,
                           preferred_element_type=jnp.float32) * scale + bias
            s = s - jnp.max(s, axis=-1, keepdims=True)
            p = jnp.exp(s)
            p = p * pl.reciprocal(jnp.sum(p, axis=-1, keepdims=True), approx=True)
            ctx = jnp.einsum("bqk,bkd->bqd", p, v,
                             preferred_element_type=jnp.float32)            # [B, S, dh]
            ctx_heads.append(ctx.reshape(m_tokens, HEAD_DIM))
        ctx_all = jnp.concatenate(ctx_heads, axis=-1)                       # [B*S, H]
        sa = jnp.dot(ctx_all, wo_ref[l],
                     preferred_element_type=jnp.float32) + bo_ref[l]        # one K=64 matmul
        x = _layer_norm(sa + x, ln1g_ref[l], ln1b_ref[l])

        # ---- FFN (tanh-approx GELU -> EUP slot) ----
        h1 = jnp.dot(x, w1_ref[l],
                     preferred_element_type=jnp.float32) + b1_ref[l]
        h1 = jax.nn.gelu(h1, approximate=True)
        h2 = jnp.dot(h1, w2_ref[l],
                     preferred_element_type=jnp.float32) + b2_ref[l]
        x = _layer_norm(h2 + x, ln2g_ref[l], ln2b_ref[l])

    # ---- CLS token + classifier head + mean cross-entropy, all in the same kernel ----
    cls = x.reshape(batch, seq, HIDDEN)[:, 0, :]                            # [B, H]
    p = jnp.dot(cls, wp_ref[...],
                preferred_element_type=jnp.float32) + bp_ref[...]
    p = jnp.maximum(p, 0.0)                                                 # ReLU
    # TODO(synk): torch.nn.Dropout is stochastic in train mode; applied as identity (eval semantics).
    z = jnp.dot(p, wc_ref[...],
                preferred_element_type=jnp.float32) + bc_ref[...]           # [B, C]

    tgt_oh = (jax.lax.broadcasted_iota(jnp.int32, (batch, NUM_CLASSES), 1)
              == tgt_ref[...]).astype(jnp.float32)                          # [B, C] one-hot
    mz = jnp.max(z, axis=-1, keepdims=True)
    lse = mz + jnp.log(jnp.sum(jnp.exp(z - mz), axis=-1, keepdims=True))
    per_ex = lse - jnp.sum(z * tgt_oh, axis=-1, keepdims=True)              # [B, 1]
    loss_ref[...] = jnp.mean(per_ex, keepdims=True)                         # mean reduction


def fused_speech_act(ids, mask, tgt, params, *, batch, seq):
    return pl.pallas_call(
        functools.partial(_model_kernel, batch=batch, seq=seq),
        out_shape=jax.ShapeDtypeStruct((1, 1), jnp.float32),
        in_specs=[_VMEM] * 23,
        out_specs=_VMEM,
    )(ids, mask, tgt,
      params["word_emb"], params["pos_emb"], params["emb_ln_g"], params["emb_ln_b"],
      params["wqkv"], params["bqkv"], params["wo"], params["bo"],
      params["ln1_g"], params["ln1_b"], params["w1"], params["b1"],
      params["w2"], params["b2"], params["ln2_g"], params["ln2_b"],
      params["w_pre"], params["b_pre"], params["w_cls"], params["b_cls"])


# ---------------- parameter init (deterministic, synthetic; layer weights stacked) ----------------
def init_params(key):
    ks = jax.random.split(key, 8)

    def dense(k, fi, fo):
        return jax.random.normal(k, (fi, fo), jnp.float32) * 0.02

    def stacked(k, fi, fo):
        return jax.random.normal(k, (N_LAYERS, fi, fo), jnp.float32) * 0.02

    return {
        "word_emb": jax.random.normal(ks[0], (VOCAB, HIDDEN), jnp.float32) * 0.02,
        "pos_emb": jax.random.normal(ks[1], (MAX_POS, HIDDEN), jnp.float32) * 0.02,
        "emb_ln_g": jnp.ones((1, HIDDEN), jnp.float32),
        "emb_ln_b": jnp.zeros((1, HIDDEN), jnp.float32),
        # per-layer weights stacked on a leading layer axis; Q|K|V concatenated
        "wqkv": stacked(ks[2], HIDDEN, 3 * HIDDEN),
        "bqkv": jnp.zeros((N_LAYERS, 1, 3 * HIDDEN), jnp.float32),
        "wo": stacked(ks[3], HIDDEN, HIDDEN),
        "bo": jnp.zeros((N_LAYERS, 1, HIDDEN), jnp.float32),
        "ln1_g": jnp.ones((N_LAYERS, 1, HIDDEN), jnp.float32),
        "ln1_b": jnp.zeros((N_LAYERS, 1, HIDDEN), jnp.float32),
        "w1": stacked(ks[4], HIDDEN, FFN),
        "b1": jnp.zeros((N_LAYERS, 1, FFN), jnp.float32),
        "w2": stacked(ks[5], FFN, HIDDEN),
        "b2": jnp.zeros((N_LAYERS, 1, HIDDEN), jnp.float32),
        "ln2_g": jnp.ones((N_LAYERS, 1, HIDDEN), jnp.float32),
        "ln2_b": jnp.zeros((N_LAYERS, 1, HIDDEN), jnp.float32),
        "w_pre": dense(ks[6], HIDDEN, HIDDEN),
        "b_pre": jnp.zeros((1, HIDDEN), jnp.float32),
        "w_cls": dense(ks[7], HIDDEN, NUM_CLASSES),
        "b_cls": jnp.zeros((1, NUM_CLASSES), jnp.float32),
    }


# ---------------- forward (mirrors SpeechActDistilBERT.forward) ----------------
def speech_act_forward(params, input_ids, attention_mask, targets):
    B, S = input_ids.shape
    ids = input_ids.reshape(B * S, 1).astype(jnp.int32)        # [B*S, 1]  (lane-1, sublane-dense)
    mask = attention_mask.astype(jnp.float32)                  # compact [B, S]
    tgt = targets.reshape(B, 1).astype(jnp.int32)              # [B, 1]
    loss = fused_speech_act(ids, mask, tgt, params, batch=B, seq=S)
    return loss[0, 0]


if __name__ == "__main__":
    key = jax.random.PRNGKey(0)
    pk, ik, tk = jax.random.split(key, 3)
    params = init_params(pk)

    # Variable-length token sequences (the torch module takes a list of lists);
    # pad_sequence + gen_attention_masks equivalents below.
    seq_lengths = [8, 5]
    max_len = max(seq_lengths)
    B = len(seq_lengths)
    raw = jax.random.randint(ik, (B, max_len), 0, VOCAB)
    pos = jnp.arange(max_len)[None, :]
    lens = jnp.array(seq_lengths)[:, None]
    attention_mask = (pos < lens).astype(jnp.int32)             # [B, S]
    input_ids = jnp.where(attention_mask > 0, raw, 0)           # padded inputs
    targets = jax.random.randint(tk, (B,), 0, NUM_CLASSES)

    loss = jax.jit(speech_act_forward)(params, input_ids, attention_mask, targets)
    jax.block_until_ready(loss)
    print("KERNEL_OK")
</pallas_src>

<mosaic_0001>
module attributes {stable_mosaic.version = 11 : i64} {
  func.func @_model_kernel(%arg0: memref<16x1xi32, #tpu.memory_space<vmem>>, %arg1: memref<2x8xf32, #tpu.memory_space<vmem>>, %arg2: memref<2x1xi32, #tpu.memory_space<vmem>>, %arg3: memref<100x64xf32, #tpu.memory_space<vmem>>, %arg4: memref<32x64xf32, #tpu.memory_space<vmem>>, %arg5: memref<1x64xf32, #tpu.memory_space<vmem>>, %arg6: memref<1x64xf32, #tpu.memory_space<vmem>>, %arg7: memref<2x64x192xf32, #tpu.memory_space<vmem>>, %arg8: memref<2x1x192xf32, #tpu.memory_space<vmem>>, %arg9: memref<2x64x64xf32, #tpu.memory_space<vmem>>, %arg10: memref<2x1x64xf32, #tpu.memory_space<vmem>>, %arg11: memref<2x1x64xf32, #tpu.memory_space<vmem>>, %arg12: memref<2x1x64xf32, #tpu.memory_space<vmem>>, %arg13: memref<2x64x128xf32, #tpu.memory_space<vmem>>, %arg14: memref<2x1x128xf32, #tpu.memory_space<vmem>>, %arg15: memref<2x128x64xf32, #tpu.memory_space<vmem>>, %arg16: memref<2x1x64xf32, #tpu.memory_space<vmem>>, %arg17: memref<2x1x64xf32, #tpu.memory_space<vmem>>, %arg18: memref<2x1x64xf32, #tpu.memory_space<vmem>>, %arg19: memref<64x64xf32, #tpu.memory_space<vmem>>, %arg20: memref<1x64xf32, #tpu.memory_space<vmem>>, %arg21: memref<64x4xf32, #tpu.memory_space<vmem>>, %arg22: memref<1x4xf32, #tpu.memory_space<vmem>>, %arg23: memref<1x1xf32, #tpu.memory_space<vmem>>) attributes {dimension_semantics = [], scalar_prefetch = 0 : i64, scratch_operands = 0 : i64, tpu.core_type = #tpu.core_type<tc>} {
    %c0 = arith.constant 0 : index
    %c0_0 = arith.constant 0 : index
    %0 = vector.load %arg0[%c0, %c0_0] : memref<16x1xi32, #tpu.memory_space<vmem>>, vector<16x1xi32>
    %1 = tpu.iota {dimensions = array<i32: 1>} : vector<16x100xi32>
    %2 = vector.broadcast %0 : vector<16x1xi32> to vector<16x100xi32>
    %3 = arith.cmpi eq, %1, %2 : vector<16x100xi32>
    %4 = arith.extui %3 : vector<16x100xi1> to vector<16x100xi32>
    %5 = arith.sitofp %4 : vector<16x100xi32> to vector<16x100xf32>
    %c0_1 = arith.constant 0 : index
    %c0_2 = arith.constant 0 : index
    %6 = vector.load %arg3[%c0_1, %c0_2] : memref<100x64xf32, #tpu.memory_space<vmem>>, vector<100x64xf32>
    %cst = arith.constant dense<0.000000e+00> : vector<16x64xf32>
    %7 = tpu.matmul %5, %6, %cst {dimension_numbers = #tpu.dot_dimension_numbers<[1], [0], [0], [1], [0, 0, 1, 1], [], []>} : vector<16x100xf32>, vector<100x64xf32>, vector<16x64xf32> -> vector<16x64xf32>
    %c0_3 = arith.constant 0 : index
    %c0_4 = arith.constant 0 : index
    %8 = vector.load %arg4[%c0_3, %c0_4] : memref<32x64xf32, #tpu.memory_space<vmem>>, vector<8x64xf32>
    %9 = tpu.concatenate %8, %8 in 0 : vector<8x64xf32>, vector<8x64xf32> -> vector<16x64xf32>
    %10 = arith.addf %7, %9 : vector<16x64xf32>
    %c0_5 = arith.constant 0 : index
    %c0_6 = arith.constant 0 : index
    %11 = vector.load %arg5[%c0_5, %c0_6] : memref<1x64xf32, #tpu.memory_space<vmem>>, vector<1x64xf32>
    %c0_7 = arith.constant 0 : index
    %c0_8 = arith.constant 0 : index
    %12 = vector.load %arg6[%c0_7, %c0_8] : memref<1x64xf32, #tpu.memory_space<vmem>>, vector<1x64xf32>
    %cst_9 = arith.constant dense<0.000000e+00> : vector<16xf32>
    %13 = vector.multi_reduction <add>, %10, %cst_9 [1] : vector<16x64xf32> to vector<16xf32>
    %14 = vector.shape_cast %13 : vector<16xf32> to vector<16x1xf32>
    %cst_10 = arith.constant 6.400000e+01 : f32
    %15 = vector.broadcast %cst_10 : f32 to vector<16x1xf32>
    %16 = arith.divf %14, %15 : vector<16x1xf32>
    %17 = vector.broadcast %16 : vector<16x1xf32> to vector<16x64xf32>
    %18 = arith.subf %10, %17 : vector<16x64xf32>
    %19 = arith.mulf %18, %18 : vector<16x64xf32>
    %cst_11 = arith.constant dense<0.000000e+00> : vector<16xf32>
    %20 = vector.multi_reduction <add>, %19, %cst_11 [1] : vector<16x64xf32> to vector<16xf32>
    %21 = vector.shape_cast %20 : vector<16xf32> to vector<16x1xf32>
    %cst_12 = arith.constant 6.400000e+01 : f32
    %22 = vector.broadcast %cst_12 : f32 to vector<16x1xf32>
    %23 = arith.divf %21, %22 : vector<16x1xf32>
    %24 = vector.broadcast %16 : vector<16x1xf32> to vector<16x64xf32>
    %25 = arith.subf %10, %24 : vector<16x64xf32>
    %cst_13 = arith.constant 9.99999996E-13 : f32
    %26 = vector.broadcast %cst_13 : f32 to vector<16x1xf32>
    %27 = arith.addf %23, %26 : vector<16x1xf32>
    %28 = math.rsqrt %27 : vector<16x1xf32>
    %29 = vector.broadcast %28 : vector<16x1xf32> to vector<16x64xf32>
    %30 = arith.mulf %25, %29 : vector<16x64xf32>
    %31 = vector.broadcast %11 : vector<1x64xf32> to vector<16x64xf32>
    %32 = arith.mulf %30, %31 : vector<16x64xf32>
    %33 = vector.broadcast %12 : vector<1x64xf32> to vector<16x64xf32>
    %34 = arith.addf %32, %33 : vector<16x64xf32>
    %c0_14 = arith.constant 0 : index
    %c0_15 = arith.constant 0 : index
    %35 = vector.load %arg1[%c0_14, %c0_15] : memref<2x8xf32, #tpu.memory_space<vmem>>, vector<2x8xf32>
    %cst_16 = arith.constant 1.000000e+00 : f32
    %36 = vector.broadcast %cst_16 : f32 to vector<2x8xf32>
    %37 = arith.subf %36, %35 : vector<2x8xf32>
    %cst_17 = arith.constant -1.000000e+09 : f32
    %38 = vector.broadcast %cst_17 : f32 to vector<2x8xf32>
    %39 = arith.mulf %37, %38 : vector<2x8xf32>
    %40 = vector.shape_cast %39 : vector<2x8xf32> to vector<2x1x8xf32>
    %c0_18 = arith.constant 0 : index
    %c0_19 = arith.constant 0 : index
    %c0_20 = arith.constant 0 : index
    %41 = vector.load %arg7[%c0_18, %c0_19, %c0_20] : memref<2x64x192xf32, #tpu.memory_space<vmem>>, vector<1x64x192xf32>
    %42 = vector.shape_cast %41 : vector<1x64x192xf32> to vector<64x192xf32>
    %cst_21 = arith.constant dense<0.000000e+00> : vector<16x192xf32>
    %43 = tpu.matmul %34, %42, %cst_21 {dimension_numbers = #tpu.dot_dimension_numbers<[1], [0], [0], [1], [0, 0, 1, 1], [], []>} : vector<16x64xf32>, vector<64x192xf32>, vector<16x192xf32> -> vector<16x192xf32>
    %c0_22 = arith.constant 0 : index
    %c0_23 = arith.constant 0 : index
    %c0_24 = arith.constant 0 : index
    %44 = vector.load %arg8[%c0_22, %c0_23, %c0_24] : memref<2x1x192xf32, #tpu.memory_space<vmem>>, vector<1x1x192xf32>
    %45 = vector.shape_cast %44 : vector<1x1x192xf32> to vector<1x192xf32>
    %46 = vector.broadcast %45 : vector<1x192xf32> to vector<16x192xf32>
    %47 = arith.addf %43, %46 : vector<16x192xf32>
    %48 = vector.extract_strided_slice %47 {offsets = [0, 0], sizes = [16, 32], strides = [1, 1]} : vector<16x192xf32> to vector<16x32xf32>
    %49 = vector.extract_strided_slice %47 {offsets = [0, 64], sizes = [16, 32], strides = [1, 1]} : vector<16x192xf32> to vector<16x32xf32>
    %50 = vector.extract_strided_slice %47 {offsets = [0, 128], sizes = [16, 32], strides = [1, 1]} : vector<16x192xf32> to vector<16x32xf32>
    %51 = vector.shape_cast %48 : vector<16x32xf32> to vector<2x8x32xf32>
    %52 = vector.shape_cast %49 : vector<16x32xf32> to vector<2x8x32xf32>
    %53 = vector.shape_cast %50 : vector<16x32xf32> to vector<2x8x32xf32>
    "tpu.trace_start"() <{level = 10 : i32, message = "bqd,bkd->bqk"}> : () -> ()
    %cst_25 = arith.constant dense<0.000000e+00> : vector<2x8x8xf32>
    %54 = tpu.matmul %51, %52, %cst_25 {dimension_numbers = #tpu.dot_dimension_numbers<[2], [2], [1], [1], [0, 0, 0, 1, 1, 1], [0], [0]>} : vector<2x8x32xf32>, vector<2x8x32xf32>, vector<2x8x8xf32> -> vector<2x8x8xf32>
    "tpu.trace_stop"() : () -> ()
    %cst_26 = arith.constant 0.176776692 : f32
    %55 = vector.broadcast %cst_26 : f32 to vector<2x8x8xf32>
    %56 = arith.mulf %54, %55 : vector<2x8x8xf32>
    %57 = vector.broadcast %40 : vector<2x1x8xf32> to vector<2x8x8xf32>
    %58 = arith.addf %56, %57 : vector<2x8x8xf32>
    %cst_27 = arith.constant dense<0xFF800000> : vector<2x8xf32>
    %59 = vector.multi_reduction <maximumf>, %58, %cst_27 [2] : vector<2x8x8xf32> to vector<2x8xf32>
    %60 = vector.shape_cast %59 : vector<2x8xf32> to vector<2x8x1xf32>
    %61 = vector.broadcast %60 : vector<2x8x1xf32> to vector<2x8x8xf32>
    %62 = arith.subf %58, %61 : vector<2x8x8xf32>
    %63 = math.exp %62 : vector<2x8x8xf32>
    %cst_28 = arith.constant dense<0.000000e+00> : vector<2x8xf32>
    %64 = vector.multi_reduction <add>, %63, %cst_28 [2] : vector<2x8x8xf32> to vector<2x8xf32>
    %65 = vector.shape_cast %64 : vector<2x8xf32> to vector<2x8x1xf32>
    %66 = tpu.reciprocal %65 {approx = true} : vector<2x8x1xf32> -> vector<2x8x1xf32>
    %67 = vector.broadcast %66 : vector<2x8x1xf32> to vector<2x8x8xf32>
    %68 = arith.mulf %63, %67 : vector<2x8x8xf32>
    "tpu.trace_start"() <{level = 10 : i32, message = "bqk,bkd->bqd"}> : () -> ()
    %cst_29 = arith.constant dense<0.000000e+00> : vector<2x8x32xf32>
    %69 = tpu.matmul %68, %53, %cst_29 {dimension_numbers = #tpu.dot_dimension_numbers<[2], [1], [1], [2], [0, 0, 0, 1, 1, 2], [0], [0]>} : vector<2x8x8xf32>, vector<2x8x32xf32>, vector<2x8x32xf32> -> vector<2x8x32xf32>
    "tpu.trace_stop"() : () -> ()
    %70 = vector.shape_cast %69 : vector<2x8x32xf32> to vector<16x32xf32>
    %71 = vector.extract_strided_slice %47 {offsets = [0, 32], sizes = [16, 32], strides = [1, 1]} : vector<16x192xf32> to vector<16x32xf32>
    %72 = vector.extract_strided_slice %47 {offsets = [0, 96], sizes = [16, 32], strides = [1, 1]} : vector<16x192xf32> to vector<16x32xf32>
    %73 = vector.extract_strided_slice %47 {offsets = [0, 160], sizes = [16, 32], strides = [1, 1]} : vector<16x192xf32> to vector<16x32xf32>
    %74 = vector.shape_cast %71 : vector<16x32xf32> to vector<2x8x32xf32>
    %75 = vector.shape_cast %72 : vector<16x32xf32> to vector<2x8x32xf32>
    %76 = vector.shape_cast %73 : vector<16x32xf32> to vector<2x8x32xf32>
    "tpu.trace_start"() <{level = 10 : i32, message = "bqd,bkd->bqk"}> : () -> ()
    %cst_30 = arith.constant dense<0.000000e+00> : vector<2x8x8xf32>
    %77 = tpu.matmul %74, %75, %cst_30 {dimension_numbers = #tpu.dot_dimension_numbers<[2], [2], [1], [1], [0, 0, 0, 1, 1, 1], [0], [0]>} : vector<2x8x32xf32>, vector<2x8x32xf32>, vector<2x8x8xf32> -> vector<2x8x8xf32>
    "tpu.trace_stop"() : () -> ()
    %cst_31 = arith.constant 0.176776692 : f32
    %78 = vector.broadcast %cst_31 : f32 to vector<2x8x8xf32>
    %79 = arith.mulf %77, %78 : vector<2x8x8xf32>
    %80 = vector.broadcast %40 : vector<2x1x8xf32> to vector<2x8x8xf32>
    %81 = arith.addf %79, %80 : vector<2x8x8xf32>
    %cst_32 = arith.constant dense<0xFF800000> : vector<2x8xf32>
    %82 = vector.multi_reduction <maximumf>, %81, %cst_32 [2] : vector<2x8x8xf32> to vector<2x8xf32>
    %83 = vector.shape_cast %82 : vector<2x8xf32> to vector<2x8x1xf32>
    %84 = vector.broadcast %83 : vector<2x8x1xf32> to vector<2x8x8xf32>
    %85 = arith.subf %81, %84 : vector<2x8x8xf32>
    %86 = math.exp %85 : vector<2x8x8xf32>
    %cst_33 = arith.constant dense<0.000000e+00> : vector<2x8xf32>
    %87 = vector.multi_reduction <add>, %86, %cst_33 [2] : vector<2x8x8xf32> to vector<2x8xf32>
    %88 = vector.shape_cast %87 : vector<2x8xf32> to vector<2x8x1xf32>
    %89 = tpu.reciprocal %88 {approx = true} : vector<2x8x1xf32> -> vector<2x8x1xf32>
    %90 = vector.broadcast %89 : vector<2x8x1xf32> to vector<2x8x8xf32>
    %91 = arith.mulf %86, %90 : vector<2x8x8xf32>
    "tpu.trace_start"() <{level = 10 : i32, message = "bqk,bkd->bqd"}> : () -> ()
    %cst_34 = arith.constant dense<0.000000e+00> : vector<2x8x32xf32>
    %92 = tpu.matmul %91, %76, %cst_34 {dimension_numbers = #tpu.dot_dimension_numbers<[2], [1], [1], [2], [0, 0, 0, 1, 1, 2], [0], [0]>} : vector<2x8x8xf32>, vector<2x8x32xf32>, vector<2x8x32xf32> -> vector<2x8x32xf32>
    "tpu.trace_stop"() : () -> ()
    %93 = vector.shape_cast %92 : vector<2x8x32xf32> to vector<16x32xf32>
    %94 = tpu.concatenate %70, %93 in 1 : vector<16x32xf32>, vector<16x32xf32> -> vector<16x64xf32>
    %c0_35 = arith.constant 0 : index
    %c0_36 = arith.constant 0 : index
    %c0_37 = arith.constant 0 : index
    %95 = vector.load %arg9[%c0_35, %c0_36, %c0_37] : memref<2x64x64xf32, #tpu.memory_space<vmem>>, vector<1x64x64xf32>
    %96 = vector.shape_cast %95 : vector<1x64x64xf32> to vector<64x64xf32>
    %cst_38 = arith.constant dense<0.000000e+00> : vector<16x64xf32>
    %97 = tpu.matmul %94, %96, %cst_38 {dimension_numbers = #tpu.dot_dimension_numbers<[1], [0], [0], [1], [0, 0, 1, 1], [], []>} : vector<16x64xf32>, vector<64x64xf32>, vector<16x64xf32> -> vector<16x64xf32>
    %c0_39 = arith.constant 0 : index
    %c0_40 = arith.constant 0 : index
    %c0_41 = arith.constant 0 : index
    %98 = vector.load %arg10[%c0_39, %c0_40, %c0_41] : memref<2x1x64xf32, #tpu.memory_space<vmem>>, vector<1x1x64xf32>
    %99 = vector.shape_cast %98 : vector<1x1x64xf32> to vector<1x64xf32>
    %100 = vector.broadcast %99 : vector<1x64xf32> to vector<16x64xf32>
    %101 = arith.addf %97, %100 : vector<16x64xf32>
    %102 = arith.addf %101, %34 : vector<16x64xf32>
    %c0_42 = arith.constant 0 : index
    %c0_43 = arith.constant 0 : index
    %c0_44 = arith.constant 0 : index
    %103 = vector.load %arg11[%c0_42, %c0_43, %c0_44] : memref<2x1x64xf32, #tpu.memory_space<vmem>>, vector<1x1x64xf32>
    %104 = vector.shape_cast %103 : vector<1x1x64xf32> to vector<1x64xf32>
    %c0_45 = arith.constant 0 : index
    %c0_46 = arith.constant 0 : index
    %c0_47 = arith.constant 0 : index
    %105 = vector.load %arg12[%c0_45, %c0_46, %c0_47] : memref<2x1x64xf32, #tpu.memory_space<vmem>>, vector<1x1x64xf32>
    %106 = vector.shape_cast %105 : vector<1x1x64xf32> to vector<1x64xf32>
    %cst_48 = arith.constant dense<0.000000e+00> : vector<16xf32>
    %107 = vector.multi_reduction <add>, %102, %cst_48 [1] : vector<16x64xf32> to vector<16xf32>
    %108 = vector.shape_cast %107 : vector<16xf32> to vector<16x1xf32>
    %cst_49 = arith.constant 6.400000e+01 : f32
    %109 = vector.broadcast %cst_49 : f32 to vector<16x1xf32>
    %110 = arith.divf %108, %109 : vector<16x1xf32>
    %111 = vector.broadcast %110 : vector<16x1xf32> to vector<16x64xf32>
    %112 = arith.subf %102, %111 : vector<16x64xf32>
    %113 = arith.mulf %112, %112 : vector<16x64xf32>
    %cst_50 = arith.constant dense<0.000000e+00> : vector<16xf32>
    %114 = vector.multi_reduction <add>, %113, %cst_50 [1] : vector<16x64xf32> to vector<16xf32>
    %115 = vector.shape_cast %114 : vector<16xf32> to vector<16x1xf32>
    %cst_51 = arith.constant 6.400000e+01 : f32
    %116 = vector.broadcast %cst_51 : f32 to vector<16x1xf32>
    %117 = arith.divf %115, %116 : vector<16x1xf32>
    %118 = vector.broadcast %110 : vector<16x1xf32> to vector<16x64xf32>
    %119 = arith.subf %102, %118 : vector<16x64xf32>
    %cst_52 = arith.constant 9.99999996E-13 : f32
    %120 = vector.broadcast %cst_52 : f32 to vector<16x1xf32>
    %121 = arith.addf %117, %120 : vector<16x1xf32>
    %122 = math.rsqrt %121 : vector<16x1xf32>
    %123 = vector.broadcast %122 : vector<16x1xf32> to vector<16x64xf32>
    %124 = arith.mulf %119, %123 : vector<16x64xf32>
    %125 = vector.broadcast %104 : vector<1x64xf32> to vector<16x64xf32>
    %126 = arith.mulf %124, %125 : vector<16x64xf32>
    %127 = vector.broadcast %106 : vector<1x64xf32> to vector<16x64xf32>
    %128 = arith.addf %126, %127 : vector<16x64xf32>
    %c0_53 = arith.constant 0 : index
    %c0_54 = arith.constant 0 : index
    %c0_55 = arith.constant 0 : index
    %129 = vector.load %arg13[%c0_53, %c0_54, %c0_55] : memref<2x64x128xf32, #tpu.memory_space<vmem>>, vector<1x64x128xf32>
    %130 = vector.shape_cast %129 : vector<1x64x128xf32> to vector<64x128xf32>
    %cst_56 = arith.constant dense<0.000000e+00> : vector<16x128xf32>
    %131 = tpu.matmul %128, %130, %cst_56 {dimension_numbers = #tpu.dot_dimension_numbers<[1], [0], [0], [1], [0, 0, 1, 1], [], []>} : vector<16x64xf32>, vector<64x128xf32>, vector<16x128xf32> -> vector<16x128xf32>
    %c0_57 = arith.constant 0 : index
    %c0_58 = arith.constant 0 : index
    %c0_59 = arith.constant 0 : index
    %132 = vector.load %arg14[%c0_57, %c0_58, %c0_59] : memref<2x1x128xf32, #tpu.memory_space<vmem>>, vector<1x1x128xf32>
    %133 = vector.shape_cast %132 : vector<1x1x128xf32> to vector<1x128xf32>
    %134 = vector.broadcast %133 : vector<1x128xf32> to vector<16x128xf32>
    %135 = arith.addf %131, %134 : vector<16x128xf32>
    %136 = arith.mulf %135, %135 : vector<16x128xf32>
    %137 = arith.mulf %135, %136 : vector<16x128xf32>
    %cst_60 = arith.constant 4.471500e-02 : f32
    %138 = vector.broadcast %cst_60 : f32 to vector<16x128xf32>
    %139 = arith.mulf %138, %137 : vector<16x128xf32>
    %140 = arith.addf %135, %139 : vector<16x128xf32>
    %cst_61 = arith.constant 0.797884583 : f32
    %141 = vector.broadcast %cst_61 : f32 to vector<16x128xf32>
    %142 = arith.mulf %141, %140 : vector<16x128xf32>
    %143 = math.tanh %142 : vector<16x128xf32>
    %cst_62 = arith.constant 1.000000e+00 : f32
    %144 = vector.broadcast %cst_62 : f32 to vector<16x128xf32>
    %145 = arith.addf %144, %143 : vector<16x128xf32>
    %cst_63 = arith.constant 5.000000e-01 : f32
    %146 = vector.broadcast %cst_63 : f32 to vector<16x128xf32>
    %147 = arith.mulf %146, %145 : vector<16x128xf32>
    %148 = arith.mulf %135, %147 : vector<16x128xf32>
    %c0_64 = arith.constant 0 : index
    %c0_65 = arith.constant 0 : index
    %c0_66 = arith.constant 0 : index
    %149 = vector.load %arg15[%c0_64, %c0_65, %c0_66] : memref<2x128x64xf32, #tpu.memory_space<vmem>>, vector<1x128x64xf32>
    %150 = vector.shape_cast %149 : vector<1x128x64xf32> to vector<128x64xf32>
    %cst_67 = arith.constant dense<0.000000e+00> : vector<16x64xf32>
    %151 = tpu.matmul %148, %150, %cst_67 {dimension_numbers = #tpu.dot_dimension_numbers<[1], [0], [0], [1], [0, 0, 1, 1], [], []>} : vector<16x128xf32>, vector<128x64xf32>, vector<16x64xf32> -> vector<16x64xf32>
    %c0_68 = arith.constant 0 : index
    %c0_69 = arith.constant 0 : index
    %c0_70 = arith.constant 0 : index
    %152 = vector.load %arg16[%c0_68, %c0_69, %c0_70] : memref<2x1x64xf32, #tpu.memory_space<vmem>>, vector<1x1x64xf32>
    %153 = vector.shape_cast %152 : vector<1x1x64xf32> to vector<1x64xf32>
    %154 = vector.broadcast %153 : vector<1x64xf32> to vector<16x64xf32>
    %155 = arith.addf %151, %154 : vector<16x64xf32>
    %156 = arith.addf %155, %128 : vector<16x64xf32>
    %c0_71 = arith.constant 0 : index
    %c0_72 = arith.constant 0 : index
    %c0_73 = arith.constant 0 : index
    %157 = vector.load %arg17[%c0_71, %c0_72, %c0_73] : memref<2x1x64xf32, #tpu.memory_space<vmem>>, vector<1x1x64xf32>
    %158 = vector.shape_cast %157 : vector<1x1x64xf32> to vector<1x64xf32>
    %c0_74 = arith.constant 0 : index
    %c0_75 = arith.constant 0 : index
    %c0_76 = arith.constant 0 : index
    %159 = vector.load %arg18[%c0_74, %c0_75, %c0_76] : memref<2x1x64xf32, #tpu.memory_space<vmem>>, vector<1x1x64xf32>
    %160 = vector.shape_cast %159 : vector<1x1x64xf32> to vector<1x64xf32>
    %cst_77 = arith.constant dense<0.000000e+00> : vector<16xf32>
    %161 = vector.multi_reduction <add>, %156, %cst_77 [1] : vector<16x64xf32> to vector<16xf32>
    %162 = vector.shape_cast %161 : vector<16xf32> to vector<16x1xf32>
    %cst_78 = arith.constant 6.400000e+01 : f32
    %163 = vector.broadcast %cst_78 : f32 to vector<16x1xf32>
    %164 = arith.divf %162, %163 : vector<16x1xf32>
    %165 = vector.broadcast %164 : vector<16x1xf32> to vector<16x64xf32>
    %166 = arith.subf %156, %165 : vector<16x64xf32>
    %167 = arith.mulf %166, %166 : vector<16x64xf32>
    %cst_79 = arith.constant dense<0.000000e+00> : vector<16xf32>
    %168 = vector.multi_reduction <add>, %167, %cst_79 [1] : vector<16x64xf32> to vector<16xf32>
    %169 = vector.shape_cast %168 : vector<16xf32> to vector<16x1xf32>
    %cst_80 = arith.constant 6.400000e+01 : f32
    %170 = vector.broadcast %cst_80 : f32 to vector<16x1xf32>
    %171 = arith.divf %169, %170 : vector<16x1xf32>
    %172 = vector.broadcast %164 : vector<16x1xf32> to vector<16x64xf32>
    %173 = arith.subf %156, %172 : vector<16x64xf32>
    %cst_81 = arith.constant 9.99999996E-13 : f32
    %174 = vector.broadcast %cst_81 : f32 to vector<16x1xf32>
    %175 = arith.addf %171, %174 : vector<16x1xf32>
    %176 = math.rsqrt %175 : vector<16x1xf32>
    %177 = vector.broadcast %176 : vector<16x1xf32> to vector<16x64xf32>
    %178 = arith.mulf %173, %177 : vector<16x64xf32>
    %179 = vector.broadcast %158 : vector<1x64xf32> to vector<16x64xf32>
    %180 = arith.mulf %178, %179 : vector<16x64xf32>
    %181 = vector.broadcast %160 : vector<1x64xf32> to vector<16x64xf32>
    %182 = arith.addf %180, %181 : vector<16x64xf32>
    %c1 = arith.constant 1 : index
    %c0_82 = arith.constant 0 : index
    %c0_83 = arith.constant 0 : index
    %183 = vector.load %arg7[%c1, %c0_82, %c0_83] : memref<2x64x192xf32, #tpu.memory_space<vmem>>, vector<1x64x192xf32>
    %184 = vector.shape_cast %183 : vector<1x64x192xf32> to vector<64x192xf32>
    %cst_84 = arith.constant dense<0.000000e+00> : vector<16x192xf32>
    %185 = tpu.matmul %182, %184, %cst_84 {dimension_numbers = #tpu.dot_dimension_numbers<[1], [0], [0], [1], [0, 0, 1, 1], [], []>} : vector<16x64xf32>, vector<64x192xf32>, vector<16x192xf32> -> vector<16x192xf32>
    %c1_85 = arith.constant 1 : index
    %c0_86 = arith.constant 0 : index
    %c0_87 = arith.constant 0 : index
    %186 = vector.load %arg8[%c1_85, %c0_86, %c0_87] : memref<2x1x192xf32, #tpu.memory_space<vmem>>, vector<1x1x192xf32>
    %187 = vector.shape_cast %186 : vector<1x1x192xf32> to vector<1x192xf32>
    %188 = vector.broadcast %187 : vector<1x192xf32> to vector<16x192xf32>
    %189 = arith.addf %185, %188 : vector<16x192xf32>
    %190 = vector.extract_strided_slice %189 {offsets = [0, 0], sizes = [16, 32], strides = [1, 1]} : vector<16x192xf32> to vector<16x32xf32>
    %191 = vector.extract_strided_slice %189 {offsets = [0, 64], sizes = [16, 32], strides = [1, 1]} : vector<16x192xf32> to vector<16x32xf32>
    %192 = vector.extract_strided_slice %189 {offsets = [0, 128], sizes = [16, 32], strides = [1, 1]} : vector<16x192xf32> to vector<16x32xf32>
    %193 = vector.shape_cast %190 : vector<16x32xf32> to vector<2x8x32xf32>
    %194 = vector.shape_cast %191 : vector<16x32xf32> to vector<2x8x32xf32>
    %195 = vector.shape_cast %192 : vector<16x32xf32> to vector<2x8x32xf32>
    "tpu.trace_start"() <{level = 10 : i32, message = "bqd,bkd->bqk"}> : () -> ()
    %cst_88 = arith.constant dense<0.000000e+00> : vector<2x8x8xf32>
    %196 = tpu.matmul %193, %194, %cst_88 {dimension_numbers = #tpu.dot_dimension_numbers<[2], [2], [1], [1], [0, 0, 0, 1, 1, 1], [0], [0]>} : vector<2x8x32xf32>, vector<2x8x32xf32>, vector<2x8x8xf32> -> vector<2x8x8xf32>
    "tpu.trace_stop"() : () -> ()
    %cst_89 = arith.constant 0.176776692 : f32
    %197 = vector.broadcast %cst_89 : f32 to vector<2x8x8xf32>
    %198 = arith.mulf %196, %197 : vector<2x8x8xf32>
    %199 = vector.broadcast %40 : vector<2x1x8xf32> to vector<2x8x8xf32>
    %200 = arith.addf %198, %199 : vector<2x8x8xf32>
    %cst_90 = arith.constant dense<0xFF800000> : vector<2x8xf32>
    %201 = vector.multi_reduction <maximumf>, %200, %cst_90 [2] : vector<2x8x8xf32> to vector<2x8xf32>
    %202 = vector.shape_cast %201 : vector<2x8xf32> to vector<2x8x1xf32>
    %203 = vector.broadcast %202 : vector<2x8x1xf32> to vector<2x8x8xf32>
    %204 = arith.subf %200, %203 : vector<2x8x8xf32>
    %205 = math.exp %204 : vector<2x8x8xf32>
    %cst_91 = arith.constant dense<0.000000e+00> : vector<2x8xf32>
    %206 = vector.multi_reduction <add>, %205, %cst_91 [2] : vector<2x8x8xf32> to vector<2x8xf32>
    %207 = vector.shape_cast %206 : vector<2x8xf32> to vector<2x8x1xf32>
    %208 = tpu.reciprocal %207 {approx = true} : vector<2x8x1xf32> -> vector<2x8x1xf32>
    %209 = vector.broadcast %208 : vector<2x8x1xf32> to vector<2x8x8xf32>
    %210 = arith.mulf %205, %209 : vector<2x8x8xf32>
    "tpu.trace_start"() <{level = 10 : i32, message = "bqk,bkd->bqd"}> : () -> ()
    %cst_92 = arith.constant dense<0.000000e+00> : vector<2x8x32xf32>
    %211 = tpu.matmul %210, %195, %cst_92 {dimension_numbers = #tpu.dot_dimension_numbers<[2], [1], [1], [2], [0, 0, 0, 1, 1, 2], [0], [0]>} : vector<2x8x8xf32>, vector<2x8x32xf32>, vector<2x8x32xf32> -> vector<2x8x32xf32>
    "tpu.trace_stop"() : () -> ()
    %212 = vector.shape_cast %211 : vector<2x8x32xf32> to vector<16x32xf32>
    %213 = vector.extract_strided_slice %189 {offsets = [0, 32], sizes = [16, 32], strides = [1, 1]} : vector<16x192xf32> to vector<16x32xf32>
    %214 = vector.extract_strided_slice %189 {offsets = [0, 96], sizes = [16, 32], strides = [1, 1]} : vector<16x192xf32> to vector<16x32xf32>
    %215 = vector.extract_strided_slice %189 {offsets = [0, 160], sizes = [16, 32], strides = [1, 1]} : vector<16x192xf32> to vector<16x32xf32>
    %216 = vector.shape_cast %213 : vector<16x32xf32> to vector<2x8x32xf32>
    %217 = vector.shape_cast %214 : vector<16x32xf32> to vector<2x8x32xf32>
    %218 = vector.shape_cast %215 : vector<16x32xf32> to vector<2x8x32xf32>
    "tpu.trace_start"() <{level = 10 : i32, message = "bqd,bkd->bqk"}> : () -> ()
    %cst_93 = arith.constant dense<0.000000e+00> : vector<2x8x8xf32>
    %219 = tpu.matmul %216, %217, %cst_93 {dimension_numbers = #tpu.dot_dimension_numbers<[2], [2], [1], [1], [0, 0, 0, 1, 1, 1], [0], [0]>} : vector<2x8x32xf32>, vector<2x8x32xf32>, vector<2x8x8xf32> -> vector<2x8x8xf32>
    "tpu.trace_stop"() : () -> ()
    %cst_94 = arith.constant 0.176776692 : f32
    %220 = vector.broadcast %cst_94 : f32 to vector<2x8x8xf32>
    %221 = arith.mulf %219, %220 : vector<2x8x8xf32>
    %222 = vector.broadcast %40 : vector<2x1x8xf32> to vector<2x8x8xf32>
    %223 = arith.addf %221, %222 : vector<2x8x8xf32>
    %cst_95 = arith.constant dense<0xFF800000> : vector<2x8xf32>
    %224 = vector.multi_reduction <maximumf>, %223, %cst_95 [2] : vector<2x8x8xf32> to vector<2x8xf32>
    %225 = vector.shape_cast %224 : vector<2x8xf32> to vector<2x8x1xf32>
    %226 = vector.broadcast %225 : vector<2x8x1xf32> to vector<2x8x8xf32>
    %227 = arith.subf %223, %226 : vector<2x8x8xf32>
    %228 = math.exp %227 : vector<2x8x8xf32>
    %cst_96 = arith.constant dense<0.000000e+00> : vector<2x8xf32>
    %229 = vector.multi_reduction <add>, %228, %cst_96 [2] : vector<2x8x8xf32> to vector<2x8xf32>
    %230 = vector.shape_cast %229 : vector<2x8xf32> to vector<2x8x1xf32>
    %231 = tpu.reciprocal %230 {approx = true} : vector<2x8x1xf32> -> vector<2x8x1xf32>
    %232 = vector.broadcast %231 : vector<2x8x1xf32> to vector<2x8x8xf32>
    %233 = arith.mulf %228, %232 : vector<2x8x8xf32>
    "tpu.trace_start"() <{level = 10 : i32, message = "bqk,bkd->bqd"}> : () -> ()
    %cst_97 = arith.constant dense<0.000000e+00> : vector<2x8x32xf32>
    %234 = tpu.matmul %233, %218, %cst_97 {dimension_numbers = #tpu.dot_dimension_numbers<[2], [1], [1], [2], [0, 0, 0, 1, 1, 2], [0], [0]>} : vector<2x8x8xf32>, vector<2x8x32xf32>, vector<2x8x32xf32> -> vector<2x8x32xf32>
    "tpu.trace_stop"() : () -> ()
    %235 = vector.shape_cast %234 : vector<2x8x32xf32> to vector<16x32xf32>
    %236 = tpu.concatenate %212, %235 in 1 : vector<16x32xf32>, vector<16x32xf32> -> vector<16x64xf32>
    %c1_98 = arith.constant 1 : index
    %c0_99 = arith.constant 0 : index
    %c0_100 = arith.constant 0 : index
    %237 = vector.load %arg9[%c1_98, %c0_99, %c0_100] : memref<2x64x64xf32, #tpu.memory_space<vmem>>, vector<1x64x64xf32>
    %238 = vector.shape_cast %237 : vector<1x64x64xf32> to vector<64x64xf32>
    %cst_101 = arith.constant dense<0.000000e+00> : vector<16x64xf32>
    %239 = tpu.matmul %236, %238, %cst_101 {dimension_numbers = #tpu.dot_dimension_numbers<[1], [0], [0], [1], [0, 0, 1, 1], [], []>} : vector<16x64xf32>, vector<64x64xf32>, vector<16x64xf32> -> vector<16x64xf32>
    %c1_102 = arith.constant 1 : index
    %c0_103 = arith.constant 0 : index
    %c0_104 = arith.constant 0 : index
    %240 = vector.load %arg10[%c1_102, %c0_103, %c0_104] : memref<2x1x64xf32, #tpu.memory_space<vmem>>, vector<1x1x64xf32>
    %241 = vector.shape_cast %240 : vector<1x1x64xf32> to vector<1x64xf32>
    %242 = vector.broadcast %241 : vector<1x64xf32> to vector<16x64xf32>
    %243 = arith.addf %239, %242 : vector<16x64xf32>
    %244 = arith.addf %243, %182 : vector<16x64xf32>
    %c1_105 = arith.constant 1 : index
    %c0_106 = arith.constant 0 : index
    %c0_107 = arith.constant 0 : index
    %245 = vector.load %arg11[%c1_105, %c0_106, %c0_107] : memref<2x1x64xf32, #tpu.memory_space<vmem>>, vector<1x1x64xf32>
    %246 = vector.shape_cast %245 : vector<1x1x64xf32> to vector<1x64xf32>
    %c1_108 = arith.constant 1 : index
    %c0_109 = arith.constant 0 : index
    %c0_110 = arith.constant 0 : index
    %247 = vector.load %arg12[%c1_108, %c0_109, %c0_110] : memref<2x1x64xf32, #tpu.memory_space<vmem>>, vector<1x1x64xf32>
    %248 = vector.shape_cast %247 : vector<1x1x64xf32> to vector<1x64xf32>
    %cst_111 = arith.constant dense<0.000000e+00> : vector<16xf32>
    %249 = vector.multi_reduction <add>, %244, %cst_111 [1] : vector<16x64xf32> to vector<16xf32>
    %250 = vector.shape_cast %249 : vector<16xf32> to vector<16x1xf32>
    %cst_112 = arith.constant 6.400000e+01 : f32
    %251 = vector.broadcast %cst_112 : f32 to vector<16x1xf32>
    %252 = arith.divf %250, %251 : vector<16x1xf32>
    %253 = vector.broadcast %252 : vector<16x1xf32> to vector<16x64xf32>
    %254 = arith.subf %244, %253 : vector<16x64xf32>
    %255 = arith.mulf %254, %254 : vector<16x64xf32>
    %cst_113 = arith.constant dense<0.000000e+00> : vector<16xf32>
    %256 = vector.multi_reduction <add>, %255, %cst_113 [1] : vector<16x64xf32> to vector<16xf32>
    %257 = vector.shape_cast %256 : vector<16xf32> to vector<16x1xf32>
    %cst_114 = arith.constant 6.400000e+01 : f32
    %258 = vector.broadcast %cst_114 : f32 to vector<16x1xf32>
    %259 = arith.divf %257, %258 : vector<16x1xf32>
    %260 = vector.broadcast %252 : vector<16x1xf32> to vector<16x64xf32>
    %261 = arith.subf %244, %260 : vector<16x64xf32>
    %cst_115 = arith.constant 9.99999996E-13 : f32
    %262 = vector.broadcast %cst_115 : f32 to vector<16x1xf32>
    %263 = arith.addf %259, %262 : vector<16x1xf32>
    %264 = math.rsqrt %263 : vector<16x1xf32>
    %265 = vector.broadcast %264 : vector<16x1xf32> to vector<16x64xf32>
    %266 = arith.mulf %261, %265 : vector<16x64xf32>
    %267 = vector.broadcast %246 : vector<1x64xf32> to vector<16x64xf32>
    %268 = arith.mulf %266, %267 : vector<16x64xf32>
    %269 = vector.broadcast %248 : vector<1x64xf32> to vector<16x64xf32>
    %270 = arith.addf %268, %269 : vector<16x64xf32>
    %c1_116 = arith.constant 1 : index
    %c0_117 = arith.constant 0 : index
    %c0_118 = arith.constant 0 : index
    %271 = vector.load %arg13[%c1_116, %c0_117, %c0_118] : memref<2x64x128xf32, #tpu.memory_space<vmem>>, vector<1x64x128xf32>
    %272 = vector.shape_cast %271 : vector<1x64x128xf32> to vector<64x128xf32>
    %cst_119 = arith.constant dense<0.000000e+00> : vector<16x128xf32>
    %273 = tpu.matmul %270, %272, %cst_119 {dimension_numbers = #tpu.dot_dimension_numbers<[1], [0], [0], [1], [0, 0, 1, 1], [], []>} : vector<16x64xf32>, vector<64x128xf32>, vector<16x128xf32> -> vector<16x128xf32>
    %c1_120 = arith.constant 1 : index
    %c0_121 = arith.constant 0 : index
    %c0_122 = arith.constant 0 : index
    %274 = vector.load %arg14[%c1_120, %c0_121, %c0_122] : memref<2x1x128xf32, #tpu.memory_space<vmem>>, vector<1x1x128xf32>
    %275 = vector.shape_cast %274 : vector<1x1x128xf32> to vector<1x128xf32>
    %276 = vector.broadcast %275 : vector<1x128xf32> to vector<16x128xf32>
    %277 = arith.addf %273, %276 : vector<16x128xf32>
    %278 = arith.mulf %277, %277 : vector<16x128xf32>
    %279 = arith.mulf %277, %278 : vector<16x128xf32>
    %cst_123 = arith.constant 4.471500e-02 : f32
    %280 = vector.broadcast %cst_123 : f32 to vector<16x128xf32>
    %281 = arith.mulf %280, %279 : vector<16x128xf32>
    %282 = arith.addf %277, %281 : vector<16x128xf32>
    %cst_124 = arith.constant 0.797884583 : f32
    %283 = vector.broadcast %cst_124 : f32 to vector<16x128xf32>
    %284 = arith.mulf %283, %282 : vector<16x128xf32>
    %285 = math.tanh %284 : vector<16x128xf32>
    %cst_125 = arith.constant 1.000000e+00 : f32
    %286 = vector.broadcast %cst_125 : f32 to vector<16x128xf32>
    %287 = arith.addf %286, %285 : vector<16x128xf32>
    %cst_126 = arith.constant 5.000000e-01 : f32
    %288 = vector.broadcast %cst_126 : f32 to vector<16x128xf32>
    %289 = arith.mulf %288, %287 : vector<16x128xf32>
    %290 = arith.mulf %277, %289 : vector<16x128xf32>
    %c1_127 = arith.constant 1 : index
    %c0_128 = arith.constant 0 : index
    %c0_129 = arith.constant 0 : index
    %291 = vector.load %arg15[%c1_127, %c0_128, %c0_129] : memref<2x128x64xf32, #tpu.memory_space<vmem>>, vector<1x128x64xf32>
    %292 = vector.shape_cast %291 : vector<1x128x64xf32> to vector<128x64xf32>
    %cst_130 = arith.constant dense<0.000000e+00> : vector<16x64xf32>
    %293 = tpu.matmul %290, %292, %cst_130 {dimension_numbers = #tpu.dot_dimension_numbers<[1], [0], [0], [1], [0, 0, 1, 1], [], []>} : vector<16x128xf32>, vector<128x64xf32>, vector<16x64xf32> -> vector<16x64xf32>
    %c1_131 = arith.constant 1 : index
    %c0_132 = arith.constant 0 : index
    %c0_133 = arith.constant 0 : index
    %294 = vector.load %arg16[%c1_131, %c0_132, %c0_133] : memref<2x1x64xf32, #tpu.memory_space<vmem>>, vector<1x1x64xf32>
    %295 = vector.shape_cast %294 : vector<1x1x64xf32> to vector<1x64xf32>
    %296 = vector.broadcast %295 : vector<1x64xf32> to vector<16x64xf32>
    %297 = arith.addf %293, %296 : vector<16x64xf32>
    %298 = arith.addf %297, %270 : vector<16x64xf32>
    %c1_134 = arith.constant 1 : index
    %c0_135 = arith.constant 0 : index
    %c0_136 = arith.constant 0 : index
    %299 = vector.load %arg17[%c1_134, %c0_135, %c0_136] : memref<2x1x64xf32, #tpu.memory_space<vmem>>, vector<1x1x64xf32>
    %300 = vector.shape_cast %299 : vector<1x1x64xf32> to vector<1x64xf32>
    %c1_137 = arith.constant 1 : index
    %c0_138 = arith.constant 0 : index
    %c0_139 = arith.constant 0 : index
    %301 = vector.load %arg18[%c1_137, %c0_138, %c0_139] : memref<2x1x64xf32, #tpu.memory_space<vmem>>, vector<1x1x64xf32>
    %302 = vector.shape_cast %301 : vector<1x1x64xf32> to vector<1x64xf32>
    %cst_140 = arith.constant dense<0.000000e+00> : vector<16xf32>
    %303 = vector.multi_reduction <add>, %298, %cst_140 [1] : vector<16x64xf32> to vector<16xf32>
    %304 = vector.shape_cast %303 : vector<16xf32> to vector<16x1xf32>
    %cst_141 = arith.constant 6.400000e+01 : f32
    %305 = vector.broadcast %cst_141 : f32 to vector<16x1xf32>
    %306 = arith.divf %304, %305 : vector<16x1xf32>
    %307 = vector.broadcast %306 : vector<16x1xf32> to vector<16x64xf32>
    %308 = arith.subf %298, %307 : vector<16x64xf32>
    %309 = arith.mulf %308, %308 : vector<16x64xf32>
    %cst_142 = arith.constant dense<0.000000e+00> : vector<16xf32>
    %310 = vector.multi_reduction <add>, %309, %cst_142 [1] : vector<16x64xf32> to vector<16xf32>
    %311 = vector.shape_cast %310 : vector<16xf32> to vector<16x1xf32>
    %cst_143 = arith.constant 6.400000e+01 : f32
    %312 = vector.broadcast %cst_143 : f32 to vector<16x1xf32>
    %313 = arith.divf %311, %312 : vector<16x1xf32>
    %314 = vector.broadcast %306 : vector<16x1xf32> to vector<16x64xf32>
    %315 = arith.subf %298, %314 : vector<16x64xf32>
    %cst_144 = arith.constant 9.99999996E-13 : f32
    %316 = vector.broadcast %cst_144 : f32 to vector<16x1xf32>
    %317 = arith.addf %313, %316 : vector<16x1xf32>
    %318 = math.rsqrt %317 : vector<16x1xf32>
    %319 = vector.broadcast %318 : vector<16x1xf32> to vector<16x64xf32>
    %320 = arith.mulf %315, %319 : vector<16x64xf32>
    %321 = vector.broadcast %300 : vector<1x64xf32> to vector<16x64xf32>
    %322 = arith.mulf %320, %321 : vector<16x64xf32>
    %323 = vector.broadcast %302 : vector<1x64xf32> to vector<16x64xf32>
    %324 = arith.addf %322, %323 : vector<16x64xf32>
    %325 = vector.shape_cast %324 : vector<16x64xf32> to vector<2x8x64xf32>
    %326 = vector.extract_strided_slice %325 {offsets = [0, 0, 0], sizes = [2, 1, 64], strides = [1, 1, 1]} : vector<2x8x64xf32> to vector<2x1x64xf32>
    %327 = vector.shape_cast %326 : vector<2x1x64xf32> to vector<2x64xf32>
    %c0_145 = arith.constant 0 : index
    %c0_146 = arith.constant 0 : index
    %328 = vector.load %arg19[%c0_145, %c0_146] : memref<64x64xf32, #tpu.memory_space<vmem>>, vector<64x64xf32>
    %cst_147 = arith.constant dense<0.000000e+00> : vector<2x64xf32>
    %329 = tpu.matmul %327, %328, %cst_147 {dimension_numbers = #tpu.dot_dimension_numbers<[1], [0], [0], [1], [0, 0, 1, 1], [], []>} : vector<2x64xf32>, vector<64x64xf32>, vector<2x64xf32> -> vector<2x64xf32>
    %c0_148 = arith.constant 0 : index
    %c0_149 = arith.constant 0 : index
    %330 = vector.load %arg20[%c0_148, %c0_149] : memref<1x64xf32, #tpu.memory_space<vmem>>, vector<1x64xf32>
    %331 = vector.broadcast %330 : vector<1x64xf32> to vector<2x64xf32>
    %332 = arith.addf %329, %331 : vector<2x64xf32>
    %cst_150 = arith.constant 0.000000e+00 : f32
    %333 = vector.broadcast %cst_150 : f32 to vector<2x64xf32>
    %334 = arith.maximumf %332, %333 : vector<2x64xf32>
    %c0_151 = arith.constant 0 : index
    %c0_152 = arith.constant 0 : index
    %335 = vector.load %arg21[%c0_151, %c0_152] : memref<64x4xf32, #tpu.memory_space<vmem>>, vector<64x4xf32>
    %cst_153 = arith.constant dense<0.000000e+00> : vector<2x4xf32>
    %336 = tpu.matmul %334, %335, %cst_153 {dimension_numbers = #tpu.dot_dimension_numbers<[1], [0], [0], [1], [0, 0, 1, 1], [], []>} : vector<2x64xf32>, vector<64x4xf32>, vector<2x4xf32> -> vector<2x4xf32>
    %c0_154 = arith.constant 0 : index
    %c0_155 = arith.constant 0 : index
    %337 = vector.load %arg22[%c0_154, %c0_155] : memref<1x4xf32, #tpu.memory_space<vmem>>, vector<1x4xf32>
    %338 = vector.broadcast %337 : vector<1x4xf32> to vector<2x4xf32>
    %339 = arith.addf %336, %338 : vector<2x4xf32>
    %340 = tpu.iota {dimensions = array<i32: 1>} : vector<2x4xi32>
    %c0_156 = arith.constant 0 : index
    %c0_157 = arith.constant 0 : index
    %341 = vector.load %arg2[%c0_156, %c0_157] : memref<2x1xi32, #tpu.memory_space<vmem>>, vector<2x1xi32>
    %342 = vector.broadcast %341 : vector<2x1xi32> to vector<2x4xi32>
    %343 = arith.cmpi eq, %340, %342 : vector<2x4xi32>
    %344 = arith.extui %343 : vector<2x4xi1> to vector<2x4xi32>
    %345 = arith.sitofp %344 : vector<2x4xi32> to vector<2x4xf32>
    %cst_158 = arith.constant dense<0xFF800000> : vector<2xf32>
    %346 = vector.multi_reduction <maximumf>, %339, %cst_158 [1] : vector<2x4xf32> to vector<2xf32>
    %347 = vector.shape_cast %346 : vector<2xf32> to vector<2x1xf32>
    %348 = vector.broadcast %347 : vector<2x1xf32> to vector<2x4xf32>
    %349 = arith.subf %339, %348 : vector<2x4xf32>
    %350 = math.exp %349 : vector<2x4xf32>
    %cst_159 = arith.constant dense<0.000000e+00> : vector<2xf32>
    %351 = vector.multi_reduction <add>, %350, %cst_159 [1] : vector<2x4xf32> to vector<2xf32>
    %352 = vector.shape_cast %351 : vector<2xf32> to vector<2x1xf32>
    %353 = math.log %352 : vector<2x1xf32>
    %354 = arith.addf %347, %353 : vector<2x1xf32>
    %355 = arith.mulf %339, %345 : vector<2x4xf32>
    %cst_160 = arith.constant dense<0.000000e+00> : vector<2xf32>
    %356 = vector.multi_reduction <add>, %355, %cst_160 [1] : vector<2x4xf32> to vector<2xf32>
    %357 = vector.shape_cast %356 : vector<2xf32> to vector<2x1xf32>
    %358 = arith.subf %354, %357 : vector<2x1xf32>
    %359 = vector.shape_cast %358 : vector<2x1xf32> to vector<1x2x1xf32>
    %cst_161 = arith.constant dense<0.000000e+00> : vector<1xf32>
    %360 = vector.multi_reduction <add>, %359, %cst_161 [1, 2] : vector<1x2x1xf32> to vector<1xf32>
    %361 = vector.shape_cast %360 : vector<1xf32> to vector<1x1x1xf32>
    %362 = vector.extract %361[0, 0, 0] : f32 from vector<1x1x1xf32>
    %363 = vector.broadcast %362 : f32 to vector<1x1xf32>
    %cst_162 = arith.constant 2.000000e+00 : f32
    %364 = vector.broadcast %cst_162 : f32 to vector<1x1xf32>
    %365 = arith.divf %363, %364 : vector<1x1xf32>
    %c0_163 = arith.constant 0 : index
    %c0_164 = arith.constant 0 : index
    %366 = vector.load %arg23[%c0_163, %c0_164] : memref<1x1xf32, #tpu.memory_space<vmem>>, vector<1x1xf32>
    tpu.vector_store %arg23[%c0_163, %c0_164], %365 {strides = array<i32>} : memref<1x1xf32, #tpu.memory_space<vmem>>, vector<1x1xf32>,
    return
  }
}

</mosaic_0001>

<bundles_post_ra>
// kernel: speech_act_forward.1
= control target key start
LH: loop header
LB: loop body
LE: loop exit
PB: predicated region body
PF: predicated region fallthrough
CT: control target
= control target key end

     0   :  { %s5204_s0 = inlined_call_operand.vmem [shape: s32[16,1], index: 0, kind: input, shape index: {}]   ;;  %s5205_s1 = inlined_call_operand.vmem [shape: f32[2,8], index: 1, kind: input, shape index: {}]   ;;  %s5206_s2 = inlined_call_operand.vmem [shape: s32[2,1], index: 2, kind: input, shape index: {}]   ;;  %s5207_s3 = inlined_call_operand.vmem [shape: f32[100,64], index: 3, kind: input, shape index: {}]   ;;  %s5208_s4 = inlined_call_operand.hbm [shape: f32[32,64], index: 4, kind: input, shape index: {}]   ;;  %s5209_s5 = inlined_call_operand.hbm [shape: f32[1,64], index: 5, kind: input, shape index: {}]   ;;  %s5210_s6 = inlined_call_operand.hbm [shape: f32[1,64], index: 6, kind: input, shape index: {}]   ;;  %s5211_s7 = inlined_call_operand.vmem [shape: f32[2,64,192], index: 7, kind: input, shape index: {}]   ;;  %s5212_s8 = inlined_call_operand.hbm [shape: f32[2,1,192], index: 8, kind: input, shape index: {}]   ;;  %s5213_s9 = inlined_call_operand.vmem [shape: f32[2,64,64], index: 9, kind: input, shape index: {}]   ;;  %s5214_s10 = inlined_call_operand.vmem [shape: f32[2,1,64], index: 10, kind: input, shape index: {}]   ;;  %s5215_s11 = inlined_call_operand.hbm [shape: f32[2,1,64], index: 11, kind: input, shape index: {}]   ;;  %s5216_s12 = inlined_call_operand.hbm [shape: f32[2,1,64], index: 12, kind: input, shape index: {}]   ;;  %s5217_s13 = inlined_call_operand.vmem [shape: f32[2,64,128], index: 13, kind: input, shape index: {}]   ;;  %s5218_s14 = inlined_call_operand.hbm [shape: f32[2,1,128], index: 14, kind: input, shape index: {}]   ;;  %s5219_s15 = inlined_call_operand.vmem [shape: f32[2,128,64], index: 15, kind: input, shape index: {}]   ;;  %s5220_s16 = inlined_call_operand.hbm [shape: f32[2,1,64], index: 16, kind: input, shape index: {}]   ;;  %s5221_s17 = inlined_call_operand.hbm [shape: f32[2,1,64], index: 17, kind: input, shape index: {}]   ;;  %s5222_s18 = inlined_call_operand.hbm [shape: f32[2,1,64], index: 18, kind: input, shape index: {}]   ;;  %s5223_s19 = inlined_call_operand.vmem [shape: f32[64,64], index: 19, kind: input, shape index: {}]   ;;  %s5224_s20 = inlined_call_operand.hbm [shape: f32[1,64], index: 20, kind: input, shape index: {}]   ;;  %s5225_s21 = inlined_call_operand.vmem [shape: f32[64,4], index: 21, kind: input, shape index: {}]   ;;  %s5226_s22 = inlined_call_operand.hbm [shape: f32[1,4], index: 22, kind: input, shape index: {}]   ;;  %s5227_s23 = inlined_call_operand.hbm [shape: f32[1,1], index: 23, kind: output, shape index: {}]  }
   0x1   :  { %5237 = sst [smem:[#allocation31_spill]] %s5204_s0 }
   0x2   :  { %5238 = sst [smem:[#allocation32_spill]] %s5205_s1 }
   0x3   :  { %5239 = sst [smem:[#allocation33_spill]] %s5206_s2 }
   0x4   :  { %5240 = sst [smem:[#allocation34_spill]] %s5207_s3 }
   0x5   :  { %5241 = sst [smem:[#allocation35_spill]] %s5208_s4 }
   0x6   :  { %5242 = sst [smem:[#allocation36_spill]] %s5209_s5 }
   0x7   :  { %5243 = sst [smem:[#allocation37_spill]] %s5210_s6 }
   0x8   :  { %5244 = sst [smem:[#allocation38_spill]] %s5211_s7 }
   0x9   :  { %5245 = sst [smem:[#allocation39_spill]] %s5227_s23 }
   0xa   :  { %28 = vsyncpa [#allocation3], 0 }
   0xb   :  { %29 = vsyncpa [#allocation6], 0 }
   0xc   :  { %30 = vsyncpa [#allocation9], 0 }
   0xd   :  { %31 = vsyncpa [#allocation12], 0 }
   0xe   :  { %32 = vsyncpa [#allocation15], 0 }
   0xf   :  { %33 = vsyncpa [#allocation18], 0 }
  0x10   :  { %34 = vsyncpa [#allocation21], 0 }
  0x11   :  { %35 = vsyncpa [#allocation4], 0  ;;  %s4200_s4 = smov [#allocation5]   ;;  %s4201_s24 = smov [#allocation8]  }
  0x12   :  { %s62_s30 = sshll.u32 %s4200_s4, 4  ;;  %s83_s25 = sshll.u32 %s4201_s24, 4  ;;  %s63_s30 = int_to_ptr.vmem [resolvable:$true] %s62_s30  ;;  %s4346_s25 = int_to_ptr.vmem [resolvable:$true] %s83_s25 }
  0x13   :  { %s5246_s26 = sld [smem:[#allocation36_spill]] }
  0x19   :  { %s3898_s2 = scalar_lea.hbm %s5246_s26, 16 }
  0x1a   :  { %p3899_p0 = scmp.ne.s32.totalorder %s5246_s26, %s3898_s2  ;;  %p3902_p1 = scmp.lt.u32.totalorder %s3898_s2, %s5246_s26 }
  0x1c   :  { %p3904_p2 = pnand %p3902_p1, %p3899_p0 }
  0x1e   :  { %3907 = shalt.err (!%p3904_p2)
}
  0x1f   :  { %s3908_s29 = scalar_lea.vmem %s63_s30, 16  ;;  %s3912_s3 = scalar_lea.vmem %s63_s30, 32 }
  0x20   :  { %p3909_p3 = scmp.ne.s32.totalorder %s63_s30, %s3908_s29  ;;  %p3913_p4 = scmp.lt.s32.totalorder %s63_s30, %s63_s30 }
  0x21   :  { %p3914_p5 = scmp.lt.s32.totalorder %s3912_s3, %s3908_s29 }
  0x23   :  { %p3915_p6 = por %p3914_p5, %p3913_p4 }
  0x25   :  { %p3916_p7 = pnand %p3915_p6, %p3909_p3 }
  0x27   :  { %3919 = shalt.err (!%p3916_p7)
}
  0x28   :  { %65 = dma.hbm_to_vmem [thread:$0]  %s5246_s26, 16, %s63_s30, [#allocation6]  }
  0x29   :  { %s3920_s1 = scalar_lea.hbm %s5212_s8, 64 }
  0x2a   :  { %p3921_p8 = scmp.ne.s32.totalorder %s5212_s8, %s3920_s1  ;;  %p3924_p9 = scmp.lt.u32.totalorder %s3920_s1, %s5212_s8 }
  0x2c   :  { %p3926_p10 = pnand %p3924_p9, %p3921_p8 }
  0x2e   :  { %3929 = shalt.err (!%p3926_p10)
}
  0x2f   :  { %s3930_s28 = scalar_lea.vmem %s4346_s25, 64  ;;  %p3935_p12 = scmp.lt.s32.totalorder %s4346_s25, %s4346_s25 }
  0x30   :  { %p3931_p11 = scmp.ne.s32.totalorder %s4346_s25, %s3930_s28  ;;  %p3936_p13 = scmp.lt.s32.totalorder %s3930_s28, %s3930_s28 }
  0x32   :  { %p3937_p0 = por %p3936_p13, %p3935_p12 }
  0x34   :  { %p3938_p1 = pnand %p3937_p0, %p3931_p11 }
  0x36   :  { %3941 = shalt.err (!%p3938_p1)
}
  0x37   :  { %s5235_s30 = smov 32   ;;  %s4203_s26 = smov 2  }
  0x38   :  { %89 = dma.hbm_to_vmem [thread:$0]  %s5212_s8, 64, %s4346_s25, [#allocation9], %s5235_s30, %s5235_s30, %s4203_s26  }
  0x39   :  { %s4204_s0 = smov [#allocation11]   ;;  %s4205_s24 = smov [#allocation14]  }
  0x3a   :  { %s111_s4 = sshll.u32 %s4204_s0, 4  ;;  %s139_s5 = sshll.u32 %s4205_s24, 4  ;;  %s112_s4 = int_to_ptr.vmem [resolvable:$true] %s111_s4  ;;  %s4379_s5 = int_to_ptr.vmem [resolvable:$true] %s139_s5 }
  0x3b   :  { %s3942_s2 = scalar_lea.hbm %s5216_s12, 32 }
  0x3c   :  { %p3943_p2 = scmp.ne.s32.totalorder %s5216_s12, %s3942_s2  ;;  %p3946_p3 = scmp.lt.u32.totalorder %s3942_s2, %s5216_s12 }
  0x3e   :  { %p3948_p4 = pnand %p3946_p3, %p3943_p2 }
  0x40   :  { %3951 = shalt.err (!%p3948_p4)
}
  0x41   :  { %s3952_s8 = scalar_lea.vmem %s112_s4, 32  ;;  %p3957_p6 = scmp.lt.s32.totalorder %s112_s4, %s112_s4 }
  0x42   :  { %p3953_p5 = scmp.ne.s32.totalorder %s112_s4, %s3952_s8  ;;  %p3958_p7 = scmp.lt.s32.totalorder %s3952_s8, %s3952_s8 }
  0x44   :  { %p3959_p8 = por %p3958_p7, %p3957_p6 }
  0x46   :  { %p3960_p9 = pnand %p3959_p8, %p3953_p5 }
  0x48   :  { %3963 = shalt.err (!%p3960_p9)
}
  0x49   :  { %s4206_s25 = smov 16   ;;  %s4207_s26 = smov 1  }
  0x4a   :  { %117 = dma.hbm_to_vmem [thread:$0]  %s5216_s12, 32, %s112_s4, [#allocation12], %s4206_s25, %s4206_s25, %s4207_s26  }
  0x4b   :  { %s3964_s24 = scalar_lea.hbm %s5220_s16, 32 }
  0x4c   :  { %p3965_p10 = scmp.ne.s32.totalorder %s5220_s16, %s3964_s24  ;;  %p3968_p11 = scmp.lt.u32.totalorder %s3964_s24, %s5220_s16 }
  0x4e   :  { %p3970_p12 = pnand %p3968_p11, %p3965_p10 }
  0x50   :  { %3973 = shalt.err (!%p3970_p12)
}
  0x51   :  { %s3974_s7 = scalar_lea.vmem %s4379_s5, 32  ;;  %p3979_p0 = scmp.lt.s32.totalorder %s4379_s5, %s4379_s5 }
  0x52   :  { %p3975_p13 = scmp.ne.s32.totalorder %s4379_s5, %s3974_s7  ;;  %p3980_p1 = scmp.lt.s32.totalorder %s3974_s7, %s3974_s7 }
  0x54   :  { %p3981_p2 = por %p3980_p1, %p3979_p0 }
  0x56   :  { %p3982_p3 = pnand %p3981_p2, %p3975_p13 }
  0x58   :  { %3985 = shalt.err (!%p3982_p3)
}
  0x59   :  { %145 = dma.hbm_to_vmem [thread:$0]  %s5220_s16, 32, %s4379_s5, [#allocation15], %s4206_s25, %s4206_s25, %s4207_s26  }
  0x5a   :  { %s4208_s28 = smov [#allocation17]   ;;  %s4209_s29 = smov [#allocation2]  }
  0x5b   :  { %s163_s8 = sshll.u32 %s4208_s28, 4  ;;  %s49_s3 = sshll.u32 %s4209_s29, 4  ;;  %s164_s8 = int_to_ptr.vmem [resolvable:$true] %s163_s8  ;;  %s4416_s3 = int_to_ptr.vmem [resolvable:$true] %s49_s3 }
  0x5c   :  { %s3986_s24 = scalar_lea.hbm %s5222_s18, 32 }
  0x5d   :  { %p3987_p4 = scmp.ne.s32.totalorder %s5222_s18, %s3986_s24  ;;  %p3990_p5 = scmp.lt.u32.totalorder %s3986_s24, %s5222_s18 }
  0x5f   :  { %p3992_p6 = pnand %p3990_p5, %p3987_p4 }
  0x61   :  { %3995 = shalt.err (!%p3992_p6)
}
  0x62   :  { %s3996_s16 = scalar_lea.vmem %s164_s8, 32  ;;  %p4001_p8 = scmp.lt.s32.totalorder %s164_s8, %s164_s8 }
  0x63   :  { %p3997_p7 = scmp.ne.s32.totalorder %s164_s8, %s3996_s16  ;;  %p4002_p9 = scmp.lt.s32.totalorder %s3996_s16, %s3996_s16 }
  0x65   :  { %p4003_p10 = por %p4002_p9, %p4001_p8 }
  0x67   :  { %p4004_p11 = pnand %p4003_p10, %p3997_p7 }
  0x69   :  { %4007 = shalt.err (!%p4004_p11)
}
  0x6a   :  { %169 = dma.hbm_to_vmem [thread:$0]  %s5222_s18, 32, %s164_s8, [#allocation18], %s4206_s25, %s4206_s25, %s4207_s26  }
  0x6b   :  { %s5247_s28 = sld [smem:[#allocation35_spill]] }
  0x71   :  { %s4008_s29 = scalar_lea.hbm %s5247_s28, 512 }
  0x72   :  { %p4009_p12 = scmp.ne.s32.totalorder %s5247_s28, %s4008_s29  ;;  %p4012_p13 = scmp.lt.u32.totalorder %s4008_s29, %s5247_s28 }
  0x74   :  { %p4014_p0 = pnand %p4012_p13, %p4009_p12 }
  0x76   :  { %4017 = shalt.err (!%p4014_p0)
}
  0x77   :  { %s4018_s6 = scalar_lea.vmem %s4416_s3, 512  ;;  %p4023_p2 = scmp.lt.s32.totalorder %s4416_s3, %s4416_s3 }
  0x78   :  { %p4019_p1 = scmp.ne.s32.totalorder %s4416_s3, %s4018_s6  ;;  %p4024_p3 = scmp.lt.s32.totalorder %s4018_s6, %s4018_s6 }
  0x7a   :  { %p4025_p4 = por %p4024_p3, %p4023_p2 }
  0x7c   :  { %p4026_p5 = pnand %p4025_p4, %p4019_p1 }
  0x7e   :  { %4029 = shalt.err (!%p4026_p5)
}
  0x7f   :  { %s4210_s18 = smov 128   ;;  %s4211_s8 = smov 8  }
  0x80   :  { %55 = dma.hbm_to_vmem [thread:$0]  %s5247_s28, 512, %s4416_s3, [#allocation3], %s4210_s18, %s4210_s18, %s4211_s8  }
  0x81   :  { %s4212_s16 = smov [#allocation7]   ;;  %s4213_s7 = smov [#allocation10]  }
  0x82   :  { %s72_s5 = sshll.u32 %s4212_s16, 4  ;;  %s99_s12 = sshll.u32 %s4213_s7, 4  ;;  %s73_s5 = int_to_ptr.vmem [resolvable:$true] %s72_s5  ;;  %s4450_s12 = int_to_ptr.vmem [resolvable:$true] %s99_s12 }
  0x83   :  { %s5248_s23 = sld [smem:[#allocation37_spill]] }
  0x89   :  { %s4030_s0 = scalar_lea.hbm %s5248_s23, 16 }
  0x8a   :  { %p4031_p6 = scmp.ne.s32.totalorder %s5248_s23, %s4030_s0  ;;  %p4034_p7 = scmp.lt.u32.totalorder %s4030_s0, %s5248_s23 }
  0x8c   :  { %p4036_p8 = pnand %p4034_p7, %p4031_p6 }
  0x8e   :  { %4039 = shalt.err (!%p4036_p8)
}
  0x8f   :  { %s4040_s3 = scalar_lea.vmem %s73_s5, 16  ;;  %s4044_s28 = scalar_lea.vmem %s73_s5, 32 }
  0x90   :  { %p4041_p9 = scmp.ne.s32.totalorder %s73_s5, %s4040_s3  ;;  %p4045_p10 = scmp.lt.s32.totalorder %s73_s5, %s73_s5 }
  0x91   :  { %p4046_p11 = scmp.lt.s32.totalorder %s4044_s28, %s4040_s3 }
  0x93   :  { %p4047_p12 = por %p4046_p11, %p4045_p10 }
  0x95   :  { %p4048_p13 = pnand %p4047_p12, %p4041_p9 }
  0x97   :  { %4051 = shalt.err (!%p4048_p13)
}
  0x98   :  { %75 = dma.hbm_to_vmem [thread:$0]  %s5248_s23, 16, %s73_s5, [#allocation6]  }
  0x99   :  { %s4052_s16 = scalar_lea.hbm %s5215_s11, 32 }
  0x9a   :  { %p4053_p0 = scmp.ne.s32.totalorder %s5215_s11, %s4052_s16  ;;  %p4056_p1 = scmp.lt.u32.totalorder %s4052_s16, %s5215_s11 }
  0x9c   :  { %p4058_p2 = pnand %p4056_p1, %p4053_p0 }
  0x9e   :  { %4061 = shalt.err (!%p4058_p2)
}
  0x9f   :  { %s4062_s0 = scalar_lea.vmem %s4450_s12, 32  ;;  %p4067_p4 = scmp.lt.s32.totalorder %s4450_s12, %s4450_s12 }
  0xa0   :  { %p4063_p3 = scmp.ne.s32.totalorder %s4450_s12, %s4062_s0  ;;  %p4068_p5 = scmp.lt.s32.totalorder %s4062_s0, %s4062_s0 }
  0xa2   :  { %p4069_p6 = por %p4068_p5, %p4067_p4 }
  0xa4   :  { %p4070_p7 = pnand %p4069_p6, %p4063_p3 }
  0xa6   :  { %4073 = shalt.err (!%p4070_p7)
}
  0xa7   :  { %105 = dma.hbm_to_vmem [thread:$0]  %s5215_s11, 32, %s4450_s12, [#allocation9], %s4206_s25, %s4206_s25, %s4207_s26  }
  0xa8   :  { %s4214_s24 = smov [#allocation13]   ;;  %s4215_s6 = smov [#allocation16]  }
  0xa9   :  { %s125_s1 = sshll.u32 %s4214_s24, 4  ;;  %s151_s3 = sshll.u32 %s4215_s6, 4  ;;  %s126_s1 = int_to_ptr.vmem [resolvable:$true] %s125_s1  ;;  %s4484_s3 = int_to_ptr.vmem [resolvable:$true] %s151_s3 }
  0xaa   :  { %s4074_s8 = scalar_lea.hbm %s5218_s14, 32 }
  0xab   :  { %p4075_p8 = scmp.ne.s32.totalorder %s5218_s14, %s4074_s8  ;;  %p4078_p9 = scmp.lt.u32.totalorder %s4074_s8, %s5218_s14 }
  0xad   :  { %p4080_p10 = pnand %p4078_p9, %p4075_p8 }
  0xaf   :  { %4083 = shalt.err (!%p4080_p10)
}
  0xb0   :  { %s4084_s11 = scalar_lea.vmem %s126_s1, 32  ;;  %p4089_p12 = scmp.lt.s32.totalorder %s126_s1, %s126_s1 }
  0xb1   :  { %p4085_p11 = scmp.ne.s32.totalorder %s126_s1, %s4084_s11  ;;  %p4090_p13 = scmp.lt.s32.totalorder %s4084_s11, %s4084_s11 }
  0xb3   :  { %p4091_p0 = por %p4090_p13, %p4089_p12 }
  0xb5   :  { %p4092_p1 = pnand %p4091_p0, %p4085_p11 }
  0xb7   :  { %4095 = shalt.err (!%p4092_p1)
}
  0xb8   :  { %131 = dma.hbm_to_vmem [thread:$0]  %s5218_s14, 32, %s126_s1, [#allocation12], %s4206_s25, %s4206_s25, %s4207_s26  }
  0xb9   :  { %s4096_s0 = scalar_lea.hbm %s5221_s17, 32 }
  0xba   :  { %p4097_p2 = scmp.ne.s32.totalorder %s5221_s17, %s4096_s0  ;;  %p4100_p3 = scmp.lt.u32.totalorder %s4096_s0, %s5221_s17 }
  0xbc   :  { %p4102_p4 = pnand %p4100_p3, %p4097_p2 }
  0xbe   :  { %4105 = shalt.err (!%p4102_p4)
}
  0xbf   :  { %s4106_s28 = scalar_lea.vmem %s4484_s3, 32  ;;  %p4111_p6 = scmp.lt.s32.totalorder %s4484_s3, %s4484_s3 }
  0xc0   :  { %p4107_p5 = scmp.ne.s32.totalorder %s4484_s3, %s4106_s28  ;;  %p4112_p7 = scmp.lt.s32.totalorder %s4106_s28, %s4106_s28 }
  0xc2   :  { %p4113_p8 = por %p4112_p7, %p4111_p6 }
  0xc4   :  { %p4114_p9 = pnand %p4113_p8, %p4107_p5 }
  0xc6   :  { %4117 = shalt.err (!%p4114_p9)
}
  0xc7   :  { %157 = dma.hbm_to_vmem [thread:$0]  %s5221_s17, 32, %s4484_s3, [#allocation15], %s4206_s25, %s4206_s25, %s4207_s26  }
  0xc8   :  { %s4216_s18 = smov [#allocation19]   ;;  %s4217_s2 = smov [#allocation20]  }
  0xc9   :  { %s178_s8 = sshll.u32 %s4216_s18, 4  ;;  %s190_s27 = sshll.u32 %s4217_s2, 4  ;;  %s179_s8 = int_to_ptr.vmem [resolvable:$true] %s178_s8  ;;  %s191_s27 = int_to_ptr.vmem [resolvable:$true] %s190_s27 }
  0xca   :  { %s4118_s11 = scalar_lea.hbm %s5224_s20, 16 }
  0xcb   :  { %p4119_p10 = scmp.ne.s32.totalorder %s5224_s20, %s4118_s11  ;;  %p4122_p11 = scmp.lt.u32.totalorder %s4118_s11, %s5224_s20 }
  0xcd   :  { %p4124_p12 = pnand %p4122_p11, %p4119_p10 }
  0xcf   :  { %4127 = shalt.err (!%p4124_p12)
}
  0xd0   :  { %s4128_s17 = scalar_lea.vmem %s179_s8, 16  ;;  %s4132_s25 = scalar_lea.vmem %s179_s8, 32 }
  0xd1   :  { %p4129_p13 = scmp.ne.s32.totalorder %s179_s8, %s4128_s17  ;;  %p4133_p0 = scmp.lt.s32.totalorder %s179_s8, %s179_s8 }
  0xd2   :  { %p4134_p1 = scmp.lt.s32.totalorder %s4132_s25, %s4128_s17 }
  0xd4   :  { %p4135_p2 = por %p4134_p1, %p4133_p0 }
  0xd6   :  { %p4136_p3 = pnand %p4135_p2, %p4129_p13 }
  0xd8   :  { %4139 = shalt.err (!%p4136_p3)
}
  0xd9   :  { %181 = dma.hbm_to_vmem [thread:$0]  %s5224_s20, 16, %s179_s8, [#allocation18]  }
  0xda   :  { %s4140_s23 = scalar_lea.hbm %s5226_s22, 16 }
  0xdb   :  { %p4141_p4 = scmp.ne.s32.totalorder %s5226_s22, %s4140_s23  ;;  %p4144_p5 = scmp.lt.u32.totalorder %s4140_s23, %s5226_s22 }
  0xdd   :  { %p4146_p6 = pnand %p4144_p5, %p4141_p4 }
  0xdf   :  { %4149 = shalt.err (!%p4146_p6)
}
  0xe0   :  { %s4150_s1 = scalar_lea.vmem %s191_s27, 16  ;;  %s4154_s18 = scalar_lea.vmem %s191_s27, 32 }
  0xe1   :  { %p4151_p7 = scmp.ne.s32.totalorder %s191_s27, %s4150_s1  ;;  %p4155_p8 = scmp.lt.s32.totalorder %s191_s27, %s191_s27 }
  0xe2   :  { %p4156_p9 = scmp.lt.s32.totalorder %s4154_s18, %s4150_s1 }
  0xe4   :  { %p4157_p10 = por %p4156_p9, %p4155_p8 }
  0xe6   :  { %p4158_p11 = pnand %p4157_p10, %p4151_p7 }
  0xe8   :  { %4161 = shalt.err (!%p4158_p11)
}
  0xe9   :  { %193 = dma.hbm_to_vmem [thread:$0]  %s5226_s22, 16, %s191_s27, [#allocation21]  }
  0xea   :  { %4184 = dma.done.wait [#allocation3], 512  }
  0xeb   :  { %4185 = vsyncadd [#allocation3], 4294966784 }
  0xec   :  { %4186 = dma.done.wait [#allocation6], 32  }
  0xed   :  { %4187 = vsyncadd [#allocation6], 4294967264 }
  0xee   :  { %4188 = dma.done.wait [#allocation9], 96  }
  0xef   :  { %4189 = vsyncadd [#allocation9], 4294967200 }
  0xf0   :  { %4190 = dma.done.wait [#allocation12], 64  }
  0xf1   :  { %4191 = vsyncadd [#allocation12], 4294967232 }
  0xf2   :  { %4192 = dma.done.wait [#allocation15], 64  }
  0xf3   :  { %4193 = vsyncadd [#allocation15], 4294967232 }
  0xf4   :  { %4194 = dma.done.wait [#allocation18], 48  }
  0xf5   :  { %4195 = vsyncadd [#allocation18], 4294967248 }
  0xf6   :  { %4196 = dma.done.wait [#allocation21], 16  }
  0xf7   :  { %4197 = vsyncadd [#allocation21], 4294967280  ;;  %v4218_v0 = vmov 0   ;;  %s5249_s22 = sld [smem:[#allocation31_spill]]  ;;  %s5250_s11 = sld [smem:[#allocation34_spill]]  ;;  %v4219_v9 = vmov 0.0   ;;  %v232_v23 = vlaneseq }
  0xf8   :  { %3832 = vset.pattern.permute.xlu0 %v4218_v0  ;;  %3833 = vset.pattern.permute.xlu1 %v4218_v0  ;;  %vm267_vm0 = vcmask 1043456   ;;  %vm260_vm1 = vcmask 818176   ;;  %v259_v29 = vld [vmem:[#allocation2] sm:$0xff]  ;;  %vm348_vm4 = vcmask 523264   ;;  %s5251_s29 = sld [smem:[#allocation38_spill]]  ;;  %vm4220_vm5 = vmmov 0  }
  0xf9   :  { %516 = vmatprep.mubr.f32.mxu1 %v4219_v9  ;;  %v4593_v24 = vand.u32 127, %v232_v23  ;;  %s4221_s23 = smov 64   ;;  %vm532_vm6 = vcmask 261120   ;;  %s5252_s28 = sld [smem:[#allocation32_spill]]  ;;  %vm698_vm7 = vcmask 64512   ;;  %vm2826_vm8 = vcmask 1041409  }
  0xfa   :  { %s5253_s14 = smov 32   ;;  %s4223_s1 = smov 96   ;;  %vm2996_vm9 = vcmask 25600   ;;  %vm3014_vm11 = vcmask 1024   ;;  %vm3028_vm12 = vcmask 0  }
  0xfb   :  { %s5254_s2 = sld [smem:[#allocation33_spill]] }
  0xfd   :  { %v230_v1 = vld [vmem:[%s5249_s22] sm:$0xff]  ;;  %v247_v3 = vld [vmem:[%s5250_s11 + $0x8] sm:$0xff]  ;;  %v248_v4 = vld [vmem:[%s5250_s11 + $0x10] sm:$0xff] }
  0xfe   :  { %v246_v2 = vld [vmem:[%s5250_s11] sm:$0xff]  ;;  %235 = vperm.xlu0 %3832, %v230_v1   ;;  %v249_v5 = vld [vmem:[%s5250_s11 + $0x18] sm:$0xff]  ;;  %v231_v6 = vld [vmem:[%s5249_s22 + $0x8] sm:$0xff] }
  0xff   :  { %v3596_v7 = vpack.c.bf16 %v247_v3, %v246_v2  ;;  %v3600_v8 = vpack.c.bf16 %v249_v5, %v248_v4  ;;  %v250_v10 = vld [vmem:[%s5250_s11 + $0x20] sm:$0xff]  ;;  %v251_v11 = vld [vmem:[%s5250_s11 + $0x28] sm:$0xff]  ;;  %v252_v13 = vld [vmem:[%s5250_s11 + $0x30] sm:$0xff] }
 0x100   :  { %v3604_v12 = vpack.c.bf16 %v251_v11, %v250_v10  ;;  %v253_v14 = vld [vmem:[%s5250_s11 + $0x38] sm:$0xff]  ;;  %v254_v16 = vld [vmem:[%s5250_s11 + $0x40] sm:$0xff]  ;;  %v255_v17 = vld [vmem:[%s5250_s11 + $0x48] sm:$0xff] }
 0x101   :  { %3597 = vmatprep.subr.bf16.mxu0 %v3596_v7  ;;  %v3608_v15 = vpack.c.bf16 %v253_v14, %v252_v13  ;;  %v3612_v18 = vpack.c.bf16 %v255_v17, %v254_v16  ;;  %v256_v19 = vld [vmem:[%s5250_s11 + $0x50] sm:$0xff]  ;;  %v257_v20 = vld [vmem:[%s5250_s11 + $0x58] sm:$0xff]  ;;  %v258_v22 = vld [vmem:[%s5250_s11 + $0x60] sm:$0xf] }
 0x102   :  { %238 = vperm.xlu0 %3832, %v231_v6   ;;  %3599 = vmatpush3.bf16.msra.mxu0 %v3596_v7  ;;  %v3616_v21 = vpack.c.bf16 %v257_v20, %v256_v19  ;;  %v419_v46 = vld [vmem:[%s5251_s29 + $0x8] sm:$0xff]  ;;  %v421_v47 = vld [vmem:[%s5251_s29 + $0x18] sm:$0xff]  ;;  %v418_v49 = vld [vmem:[%s5251_s29] sm:$0xff] }
 0x103   :  { %3601 = vmatprep.subr.bf16.mxu0 %v3600_v8  ;;  %v3620_v48 = vpack.c.bf16 %v421_v47, %v419_v46  ;;  %v420_v50 = vld [vmem:[%s5251_s29 + $0x10] sm:$0xff]  ;;  %v423_v52 = vld [vmem:[%s5251_s29 + $0x28] sm:$0xff]  ;;  %v425_v53 = vld [vmem:[%s5251_s29 + $0x38] sm:$0xff] }
 0x104   :  { %v3622_v51 = vpack.c.bf16 %v420_v50, %v418_v49  ;;  %v3624_v54 = vpack.c.bf16 %v425_v53, %v423_v52  ;;  %v422_v55 = vld [vmem:[%s5251_s29 + $0x20] sm:$0xff]  ;;  %v424_v56 = vld [vmem:[%s5251_s29 + $0x30] sm:$0xff]  ;;  %v427_v58 = vld [vmem:[%s5251_s29 + $0x48] sm:$0xff] }
 0x105   :  { %3621 = vmatprep.subr.bf16.mxu1 %v3620_v48  ;;  %v3626_v57 = vpack.c.bf16 %v424_v56, %v422_v55  ;;  %v429_v59 = vld [vmem:[%s5251_s29 + $0x58] sm:$0xff]  ;;  %v426_v60 = vld [vmem:[%s5251_s29 + $0x40] sm:$0xff]  ;;  %v428_v62 = vld [vmem:[%s5251_s29 + $0x50] sm:$0xff] }
 0x106   :  { %3603 = vmatpush3.bf16.msra.mxu0 %v3600_v8  ;;  %3623 = vmatpush1.bf16.msra.mxu1 %v3622_v51  ;;  %v3628_v61 = vpack.c.bf16 %v429_v59, %v427_v58  ;;  %v431_v63 = vld [vmem:[%s5251_s29 + $0x68] sm:$0xff]  ;;  %v433_v0 = vld [vmem:[%s5251_s29 + $0x78] sm:$0xff]  ;;  %v3630_v1 = vpack.c.bf16 %v428_v62, %v426_v60  ;;  %v430_v3 = vld [vmem:[%s5251_s29 + $0x60] sm:$0xff] }
 0x107   :  { %3605 = vmatprep.subr.bf16.mxu0 %v3604_v12  ;;  %3625 = vmatprep.subr.bf16.mxu1 %v3624_v54  ;;  %v3632_v2 = vpack.c.bf16 %v433_v0, %v431_v63  ;;  %v432_v4 = vld [vmem:[%s5251_s29 + $0x70] sm:$0xff]  ;;  %v3056_v14 = vld [vmem:[#allocation5] ss:$0 sm:$0xff]  ;;  %v3057_v16 = vld [vmem:[#allocation7] ss:$0 sm:$0xff] }
 0x108   :  { %v3634_v5 = vpack.c.bf16 %v432_v4, %v430_v3 }
 0x10a   :  { %3607 = vmatpush3.bf16.msra.mxu0 %v3604_v12  ;;  %3627 = vmatpush1.bf16.msra.mxu1 %v3626_v57 }
 0x10b   :  { %3609 = vmatprep.subr.bf16.mxu0 %v3608_v15  ;;  %3629 = vmatprep.subr.bf16.mxu1 %v3628_v61 }
 0x10e   :  { %3611 = vmatpush3.bf16.msra.mxu0 %v3608_v15  ;;  %3631 = vmatpush1.bf16.msra.mxu1 %v3630_v1 }
 0x10f   :  { %3613 = vmatprep.subr.bf16.mxu0 %v3612_v18  ;;  %3633 = vmatprep.subr.bf16.mxu1 %v3632_v2 }
 0x112   :  { %3615 = vmatpush3.bf16.msra.mxu0 %v3612_v18  ;;  %3635 = vmatpush1.bf16.msra.mxu1 %v3634_v5 }
 0x113   :  { %3617 = vmatprep.subr.bf16.mxu0 %v3616_v21  ;;  %3332 = vmatprep.subr.mxu1 %v4219_v9 }
 0x116   :  { %3619 = vmatpush3.bf16.msra.mxu0 %v3616_v21 }
 0x117   :  { %3327 = vmatprep.subr.msk.mxu0 %vm267_vm0, %v258_v22 }
 0x11a   :  { %3328 = vmatpush3.msk.msra.mxu0 %vm267_vm0, %v258_v22 }
 0x11b   :  { %3342 = vmatprep.subr.mxu0 %v4219_v9 }
 0x17d   :  { %v236_v25 = vpop.permute.xlu0 %235 }
 0x17e   :  { %vm240_vm2 = vcmp.eq.s32.totalorder %v4593_v24, %v236_v25  ;;  %v4662_v25 = vshrl.u32 %v232_v23, 7 }
 0x17f   :  { %v3051_v26 = vsel %vm240_vm2, 1.0, %v4219_v9 }
 0x180   :  { %3329 = vmatprep.mubr.msk.f32.mxu0 %vm260_vm1, %v3051_v26  ;;  %v4669_v26 = vsub.s32 0, %v4662_v25 }
 0x181   :  { %v239_v27 = vpop.permute.xlu0 %238 }
 0x182   :  { %vm241_vm3 = vcmp.eq.s32.totalorder %v4593_v24, %v239_v27  ;;  %v434_v27 = vld [vmem:[#allocation8] sm:$0x3] }
 0x183   :  { %v3052_v28 = vsel %vm241_vm3, 1.0, %v4219_v9 }
 0x184   :  { %3330 = vmatmul.mubr.msk.f32.vlgmr.msra.gmra.mrb[0].mxu0 %vm260_vm1, %v3052_v28  ;;  %v442_v28 = vsub.s32 1, %v4662_v25 }
 0x185   :  { %3344 = vmatprep.mubr.msk.f32.mxu0 %vm4220_vm5, %v4219_v9 }
 0x257   :  { %v3331_v30 = vpop.f32.mrb[0].mxu0 }
 0x258   :  { %v337_v31 = vpop.f32.mrb[1].mxu0  ;;  %v343_v33 = vadd.f32 %v3331_v30, %v259_v29  ;;  %v443_v30 = vrot.slane %v434_v27, %v442_v28 }
 0x259   :  { %v338_v32 = vadd.f32 %v337_v31, %v259_v29  ;;  %v439_v29 = vrot.slane %v434_v27, %v4669_v26 }
 0x25a   :  { %v352_v35 = vsel %vm348_vm4, %v343_v33, 0.0 }
 0x25b   :  { %v349_v34 = vsel %vm348_vm4, %v338_v32, 0.0 }
 0x25c   :  { %350 = vadd.xlane.f32.xlu1 %v349_v34 }
 0x260   :  { %353 = vadd.xlane.f32.xlu1 %v352_v35 }
 0x2e9   :  { %v351_v36 = vpop.xlane.xlu1 %350 }
 0x2ea   :  { %v356_v37 = vmul.f32 0.015625, %v351_v36 }
 0x2ec   :  { %v358_v38 = vsub.f32 %v338_v32, %v356_v37 }
 0x2ed   :  { %v354_v39 = vpop.xlane.xlu1 %353 }
 0x2ee   :  { %v357_v40 = vmul.f32 0.015625, %v354_v39  ;;  %v360_v41 = vmul.f32 %v358_v38, %v358_v38 }
 0x2f0   :  { %v359_v42 = vsub.f32 %v343_v33, %v357_v40  ;;  %v362_v43 = vsel %vm348_vm4, %v360_v41, 0.0  ;;  %v4222_v40 = vmov 1966171168  }
 0x2f1   :  { %363 = vadd.xlane.f32.xlu0 %v362_v43  ;;  %v397_v41 = vunpack.c.l.s4 %v4222_v40 }
 0x2f2   :  { %v361_v44 = vmul.f32 %v359_v42, %v359_v42 }
 0x2f3   :  { %v398_v43 = vunpack.c.0.s8 %v397_v41 }
 0x2f4   :  { %v365_v45 = vsel %vm348_vm4, %v361_v44, 0.0 }
 0x2f5   :  { %366 = vadd.xlane.f32.xlu1 %v365_v45  ;;  %v401_v45 = vsub.s32 %v398_v43, %v4662_v25 }
 0x37e   :  { %v364_v6 = vpop.xlane.xlu0 %363 }
 0x37f   :  { %v368_v7 = vmul.f32 0.015625, %v364_v6 }
 0x381   :  { %v370_v8 = vadd.f32 1e-12, %v368_v7 }
 0x382   :  { %v367_v10 = vpop.xlane.xlu1 %366 }
 0x383   :  { %3834 = vrsqrt.f32 %v370_v8  ;;  %v369_v11 = vmul.f32 0.015625, %v367_v10 }
 0x385   :  { %v371_v12 = vadd.f32 1e-12, %v369_v11 }
 0x387   :  { %3836 = vrsqrt.f32 %v371_v12 }
 0x38d   :  { %v3835_v13 = vpop.eup %3834 }
 0x38e   :  { %v374_v15 = vmul.f32 %v3835_v13, %v358_v38 }
 0x390   :  { %v382_v17 = vmul.f32 %v3056_v14, %v374_v15 }
 0x391   :  { %v3837_v18 = vpop.eup %3836 }
 0x392   :  { %v4652_v19 = vadd.f32 %v3057_v16, %v382_v17  ;;  %v375_v20 = vmul.f32 %v3837_v18, %v359_v42  ;;  %v392_v42 = vld [vmem:[%s5252_s28] sm:$0x3] }
 0x393   :  { %v393_v44 = vsub.f32 1.0, %v392_v42 }
 0x394   :  { %3058 = vmatmul.mubr.msk.f32.vlgmr.msra.gmra.mrb[0].mxu1 %vm348_vm4, %v4652_v19  ;;  %v383_v21 = vmul.f32 %v3056_v14, %v375_v20 }
 0x395   :  { %522 = vmatprep.mubr.f32.mxu1 %v4219_v9  ;;  %v394_v46 = vmul.f32 -1e+09, %v393_v44 }
 0x396   :  { %v4657_v22 = vadd.f32 %v3057_v16, %v383_v21 }
 0x397   :  { %v402_v47 = vrot.slane %v394_v46, %v401_v45 }
 0x398   :  { %3059 = vmatmul.mubr.msk.f32.gmra.mrb[2].mxu1 %vm348_vm4, %v4657_v22 }
 0x399   :  { %3334 = vmatprep.mubr.msk.f32.mxu1 %vm4220_vm5, %v4219_v9  ;;  %v410_v48 = vrot.slane %v402_v47, %v401_v45  ;;  %v403_v49 = vcombine.high %v402_v47, %v402_v47 }
 0x39b   :  { %v4700_v50 = vrot.slane %v410_v48, %v4669_v26  ;;  %v417_v51 = vrot.slane %v403_v49, %v401_v45 }
 0x39d   :  { %v4704_v56 = vrot.slane %v417_v51, %v4669_v26 }
 0x467   :  { %v518_v23 = vpop.f32.mrb[0].mxu1 }
 0x468   :  { %v519_v31 = vadd.f32 %v518_v23, %v439_v29  ;;  %v520_v32 = vpop.f32.mrb[1].mxu1 }
 0x469   :  { %v4675_v33 = vadd.f32 %v520_v32, %v443_v30 }
 0x46a   :  { %530 = vrot.lane.b32.xlu1 %v519_v31, %s4221_s23 }
 0x46b   :  { %v524_v34 = vpop.f32.mrb[2].mxu1  ;;  %3343 = vmatpush3.msra.mxu0 %v4675_v33 }
 0x46c   :  { %v525_v35 = vadd.f32 %v524_v34, %v439_v29  ;;  %v526_v36 = vpop.f32.mrb[3].mxu1  ;;  %3352 = vmatprep.subr.mxu0 %v4219_v9 }
 0x46d   :  { %v4680_v37 = vadd.f32 %v526_v36, %v443_v30 }
 0x46e   :  { %608 = vrot.lane.b32.xlu1 %v525_v35, %s4221_s23 }
 0x4dc   :  { %v531_v38 = vpop.permute.xlu1 %530 }
 0x4dd   :  { %3333 = vmatpush3.xpose.msk.msra.mxu1 %vm532_vm6, %v531_v38 }
 0x4de   :  { %3337 = vmatprep.subr.mxu1 %v4219_v9 }
 0x4e0   :  { %3335 = vmatmul.mubr.msk.f32.vlgmr.msra.gmra.mrb[4].mxu1 %vm532_vm6, %v519_v31  ;;  %v609_v39 = vpop.permute.xlu1 %608 }
 0x4e1   :  { %3338 = vmatpush3.xpose.msk.msra.mxu1 %vm532_vm6, %v609_v39  ;;  %3339 = vmatprep.mubr.msk.f32.mxu1 %vm4220_vm5, %v4219_v9 }
 0x4e2   :  { %3347 = vmatprep.subr.mxu1 %v4219_v9 }
 0x4e4   :  { %3340 = vmatmul.mubr.msk.f32.vlgmr.msra.gmra.mrb[6].mxu1 %vm532_vm6, %v525_v35 }
 0x4e5   :  { %3348 = vmatpush3.msra.mxu1 %v4680_v37  ;;  %3349 = vmatprep.mubr.msk.f32.mxu1 %vm4220_vm5, %v4219_v9 }
 0x4e6   :  { %3357 = vmatprep.subr.mxu1 %v4219_v9 }
 0x5b3   :  { %v603_v52 = vpop.f32.mrb[4].mxu1 }
 0x5b4   :  { %v684_v53 = vmul.f32 0.17677669, %v603_v52  ;;  %v3336_v54 = vpop.f32.mrb[5].mxu1 }
 0x5b6   :  { %v696_v55 = vadd.f32 %v4700_v50, %v684_v53 }
 0x5b7   :  { %v680_v57 = vpop.f32.mrb[6].mxu1 }
 0x5b8   :  { %v685_v58 = vmul.f32 0.17677669, %v680_v57  ;;  %v3341_v59 = vpop.f32.mrb[7].mxu1  ;;  %v699_v60 = vsel %vm698_vm7, %v696_v55, -inf }
 0x5b9   :  { %700 = vmax.xlane.f32.xlu1 %v699_v60 }
 0x5ba   :  { %v697_v61 = vadd.f32 %v4704_v56, %v685_v58 }
 0x5bc   :  { %v702_v62 = vsel %vm698_vm7, %v697_v61, -inf }
 0x5bd   :  { %703 = vmax.xlane.f32.xlu0 %v702_v62  ;;  %v1215_v62 = vld [vmem:[%s5213_s9 + $0x10] sm:$0xff] }
 0x5ca   :  { %947 = vrot.lane.b32.xlu1 %v525_v35, %s5253_s14 }
 0x5d3   :  { %869 = vrot.lane.b32.xlu0 %v519_v31, %s5253_s14 }
 0x5d7   :  { %867 = vrot.lane.b32.xlu0 %v519_v31, %s4223_s1 }
 0x646   :  { %v701_v63 = vpop.xlane.xlu1 %700 }
 0x647   :  { %v705_v0 = vsub.f32 %v696_v55, %v701_v63 }
 0x649   :  { %v707_v1 = vmul.f32 1.442695, %v705_v0  ;;  %v1216_v0 = vld [vmem:[%s5213_s9 + $0x18] sm:$0xff] }
 0x64a   :  { %v704_v2 = vpop.xlane.xlu0 %703  ;;  %v948_v18 = vpop.permute.xlu1 %947 }
 0x64b   :  { %3838 = vpow2.f32 %v707_v1  ;;  %v706_v3 = vsub.f32 %v697_v61, %v704_v2  ;;  %v1213_v61 = vld [vmem:[%s5213_s9] sm:$0xff]  ;;  %v3640_v1 = vpack.c.bf16 %v1216_v0, %v1215_v62 }
 0x64c   :  { %v1217_v2 = vld [vmem:[%s5213_s9 + $0x20] sm:$0xff] }
 0x64d   :  { %v709_v4 = vmul.f32 1.442695, %v706_v3  ;;  %v1218_v3 = vld [vmem:[%s5213_s9 + $0x28] sm:$0xff] }
 0x64e   :  { %v870_v10 = vpop.permute.xlu0 %869 }
 0x64f   :  { %3840 = vpow2.f32 %v709_v4  ;;  %v3644_v4 = vpack.c.bf16 %v1218_v3, %v1217_v2 }
 0x652   :  { %v868_v11 = vpop.permute.xlu0 %867 }
 0x655   :  { %v3839_v5 = vpop.eup %3838 }
 0x656   :  { %v711_v6 = vsel %vm698_vm7, %v3839_v5, 0.0 }
 0x657   :  { %712 = vadd.xlane.f32.xlu0 %v711_v6  ;;  %v1220_v6 = vld [vmem:[%s5213_s9 + $0x38] sm:$0xff] }
 0x659   :  { %v3841_v7 = vpop.eup %3840 }
 0x65a   :  { %v714_v8 = vsel %vm698_vm7, %v3841_v7, 0.0 }
 0x65b   :  { %715 = vadd.xlane.f32.xlu0 %v714_v8 }
 0x671   :  { %945 = vrot.lane.b32.xlu0 %v525_v35, %s4223_s1 }
 0x6e4   :  { %v713_v12 = vpop.xlane.xlu0 %712 }
 0x6e5   :  { %3842 = vrcp.f32 %v713_v12 }
 0x6e8   :  { %v716_v13 = vpop.xlane.xlu0 %715 }
 0x6e9   :  { %3844 = vrcp.f32 %v716_v13 }
 0x6ec   :  { %v946_v20 = vpop.permute.xlu0 %945 }
 0x6ef   :  { %v3843_v14 = vpop.eup %3842 }
 0x6f0   :  { %v719_v15 = vmul.f32 %v3843_v14, %v3839_v5  ;;  %v1219_v5 = vld [vmem:[%s5213_s9 + $0x30] sm:$0xff] }
 0x6f2   :  { %3345 = vmatmul.mubr.msk.f32.vlgmr.msra.gmra.mrb[2].mxu0 %vm698_vm7, %v719_v15 }
 0x6f3   :  { %v3845_v16 = vpop.eup %3844  ;;  %3353 = vmatpush3.xpose.msk.msra.mxu0 %vm532_vm6, %v870_v10  ;;  %3354 = vmatprep.mubr.msk.f32.mxu0 %vm4220_vm5, %v4219_v9 }
 0x6f4   :  { %v720_v17 = vmul.f32 %v3845_v16, %v3841_v7  ;;  %3362 = vmatprep.subr.mxu0 %v4219_v9  ;;  %v3648_v7 = vpack.c.bf16 %v1220_v6, %v1219_v5  ;;  %v1469_v6 = vld [vmem:[%s5219_s15] sm:$0xff] }
 0x6f6   :  { %3350 = vmatmul.mubr.msk.f32.vlgmr.msra.gmra.mrb[8].mxu1 %vm698_vm7, %v720_v17  ;;  %3355 = vmatmul.mubr.msk.f32.vlgmr.msra.gmra.mrb[4].mxu0 %vm532_vm6, %v868_v11  ;;  %v3072_v17 = vld [vmem:[%s5214_s10] ss:$0 sm:$0xff] }
 0x6f7   :  { %3358 = vmatpush3.xpose.msk.msra.mxu1 %vm532_vm6, %v948_v18  ;;  %3359 = vmatprep.mubr.msk.f32.mxu1 %vm4220_vm5, %v4219_v9 }
 0x6f8   :  { %3367 = vmatprep.subr.mxu1 %v4219_v9  ;;  %3364 = vmatprep.mubr.msk.f32.mxu0 %vm4220_vm5, %v4219_v9 }
 0x6fa   :  { %3360 = vmatmul.mubr.msk.f32.vlgmr.msra.gmra.mrb[10].mxu1 %vm532_vm6, %v946_v20 }
 0x6fb   :  { %3369 = vmatprep.mubr.msk.f32.mxu1 %vm4220_vm5, %v4219_v9 }
 0x7c5   :  { %v4731_v21 = vpop.f32.mrb[2].mxu0 }
 0x7c6   :  { %v3346_v27 = vpop.f32.mrb[3].mxu0 }
 0x7c9   :  { %v4733_v29 = vpop.f32.mrb[8].mxu1  ;;  %v941_v30 = vpop.f32.mrb[4].mxu0 }
 0x7ca   :  { %v1023_v23 = vmul.f32 0.17677669, %v941_v30  ;;  %v3351_v31 = vpop.f32.mrb[9].mxu1  ;;  %v3356_v32 = vpop.f32.mrb[5].mxu0 }
 0x7cc   :  { %v1025_v34 = vadd.f32 %v1023_v23, %v4700_v50 }
 0x7cd   :  { %v1019_v35 = vpop.f32.mrb[10].mxu1 }
 0x7ce   :  { %v1024_v36 = vmul.f32 0.17677669, %v1019_v35  ;;  %v3361_v38 = vpop.f32.mrb[11].mxu1  ;;  %v1027_v39 = vsel %vm698_vm7, %v1025_v34, -inf }
 0x7cf   :  { %1028 = vmax.xlane.f32.xlu0 %v1027_v39 }
 0x7d0   :  { %v1026_v40 = vadd.f32 %v1024_v36, %v4704_v56 }
 0x7d2   :  { %v1030_v41 = vsel %vm698_vm7, %v1026_v40, -inf }
 0x7d3   :  { %1031 = vmax.xlane.f32.xlu1 %v1030_v41 }
 0x7e4   :  { %1127 = vrot.lane.b32.xlu1 %v4680_v37, %s4223_s1 }
 0x85c   :  { %v1029_v42 = vpop.xlane.xlu0 %1028 }
 0x85d   :  { %v1033_v43 = vsub.f32 %v1025_v34, %v1029_v42 }
 0x85f   :  { %v1035_v44 = vmul.f32 1.442695, %v1033_v43  ;;  %v1356_v43 = vld [vmem:[%s5217_s13 + $0x8] sm:$0xff] }
 0x860   :  { %v1032_v45 = vpop.xlane.xlu1 %1031 }
 0x861   :  { %3846 = vpow2.f32 %v1035_v44  ;;  %v1034_v46 = vsub.f32 %v1026_v40, %v1032_v45  ;;  %v1357_v45 = vld [vmem:[%s5217_s13 + $0x10] sm:$0xff] }
 0x863   :  { %v1037_v47 = vmul.f32 1.442695, %v1034_v46  ;;  %v1358_v46 = vld [vmem:[%s5217_s13 + $0x18] sm:$0xff] }
 0x864   :  { %v1128_v48 = vpop.permute.xlu1 %1127 }
 0x865   :  { %3848 = vpow2.f32 %v1037_v47  ;;  %3368 = vmatpush3.msra.mxu1 %v1128_v48  ;;  %v3656_v47 = vpack.c.bf16 %v1358_v46, %v1357_v45  ;;  %v1359_v48 = vld [vmem:[%s5217_s13 + $0x20] sm:$0xff] }
 0x86b   :  { %v3847_v49 = vpop.eup %3846 }
 0x86c   :  { %v1039_v51 = vsel %vm698_vm7, %v3847_v49, 0.0 }
 0x86d   :  { %1040 = vadd.xlane.f32.xlu0 %v1039_v51 }
 0x86f   :  { %v3849_v52 = vpop.eup %3848 }
 0x870   :  { %v1042_v53 = vsel %vm698_vm7, %v3849_v52, 0.0 }
 0x871   :  { %1043 = vadd.xlane.f32.xlu0 %v1042_v53  ;;  %v1362_v53 = vld [vmem:[%s5217_s13 + $0x38] sm:$0xff] }
 0x887   :  { %1050 = vrot.lane.b32.xlu0 %v4675_v33, %s4223_s1  ;;  %v1214_v33 = vld [vmem:[%s5213_s9 + $0x8] sm:$0xff] }
 0x888   :  { %v3636_v63 = vpack.c.bf16 %v1214_v33, %v1213_v61  ;;  %v3075_v33 = vld [vmem:[#allocation10] ss:$0 sm:$0xff] }
 0x8fa   :  { %v1041_v37 = vpop.xlane.xlu0 %1040 }
 0x8fb   :  { %3850 = vrcp.f32 %v1041_v37 }
 0x8fe   :  { %v1044_v54 = vpop.xlane.xlu0 %1043 }
 0x8ff   :  { %3852 = vrcp.f32 %v1044_v54 }
 0x902   :  { %v1051_v55 = vpop.permute.xlu0 %1050 }
 0x903   :  { %3363 = vmatpush3.msra.mxu0 %v1051_v55 }
 0x904   :  { %3637 = vmatprep.subr.bf16.mxu0 %v3636_v63 }
 0x905   :  { %v3851_v57 = vpop.eup %3850 }
 0x906   :  { %v1047_v58 = vmul.f32 %v3851_v57, %v3847_v49  ;;  %v1360_v49 = vld [vmem:[%s5217_s13 + $0x28] sm:$0xff] }
 0x907   :  { %v3660_v51 = vpack.c.bf16 %v1360_v49, %v1359_v48 }
 0x908   :  { %3365 = vmatmul.mubr.msk.f32.vlgmr.msra.gmra.mrb[6].mxu0 %vm698_vm7, %v1047_v58 }
 0x909   :  { %v3853_v59 = vpop.eup %3852  ;;  %3639 = vmatpush3.bf16.msra.mxu0 %v3636_v63 }
 0x90a   :  { %v1048_v60 = vmul.f32 %v3853_v59, %v3849_v52  ;;  %3641 = vmatprep.subr.bf16.mxu0 %v3640_v1  ;;  %v1361_v52 = vld [vmem:[%s5217_s13 + $0x30] sm:$0xff] }
 0x90b   :  { %v3664_v37 = vpack.c.bf16 %v1362_v53, %v1361_v52 }
 0x90c   :  { %3370 = vmatmul.mubr.msk.f32.vlgmr.msra.gmra.mrb[12].mxu1 %vm698_vm7, %v1048_v60 }
 0x90d   :  { %3643 = vmatpush3.bf16.msra.mxu0 %v3640_v1  ;;  %v3076_v1 = vld [vmem:[#allocation11] ss:$0 sm:$0xff] }
 0x90e   :  { %3645 = vmatprep.subr.bf16.mxu0 %v3644_v4 }
 0x911   :  { %3647 = vmatpush3.bf16.msra.mxu0 %v3644_v4 }
 0x912   :  { %3649 = vmatprep.subr.bf16.mxu0 %v3648_v7 }
 0x915   :  { %3651 = vmatpush3.bf16.msra.mxu0 %v3648_v7  ;;  %v1470_v7 = vld [vmem:[%s5219_s15 + $0x8] sm:$0xff] }
 0x9db   :  { %v1122_v8 = vpop.f32.mrb[6].mxu0 }
 0x9dc   :  { %1205 = vrot.lane.b32.xlu1 %v1122_v8, %s5253_s14  ;;  %v3366_v10 = vpop.f32.mrb[7].mxu0  ;;  %v3668_v8 = vpack.c.bf16 %v1470_v7, %v1469_v6 }
 0x9dd   :  { %v1471_v10 = vld [vmem:[%s5219_s15 + $0x10] sm:$0xff] }
 0x9de   :  { %3669 = vmatprep.subr.bf16.mxu0 %v3668_v8 }
 0x9df   :  { %v1199_v11 = vpop.f32.mrb[12].mxu1 }
 0x9e0   :  { %1207 = vrot.lane.b32.xlu0 %v1199_v11, %s5253_s14  ;;  %v3371_v12 = vpop.f32.mrb[13].mxu1  ;;  %v1472_v11 = vld [vmem:[%s5219_s15 + $0x18] sm:$0xff] }
 0x9e1   :  { %v3672_v12 = vpack.c.bf16 %v1472_v11, %v1471_v10 }
 0xa4e   :  { %v1206_v13 = vpop.permute.xlu1 %1205 }
 0xa4f   :  { %v1211_v14 = vsel %vm532_vm6, %v4731_v21, %v1206_v13  ;;  %v1473_v13 = vld [vmem:[%s5219_s15 + $0x20] sm:$0xff] }
 0xa50   :  { %3388 = vmatprep.mubr.msk.f32.mxu0 %vm348_vm4, %v1211_v14  ;;  %v1474_v14 = vld [vmem:[%s5219_s15 + $0x28] sm:$0xff] }
 0xa52   :  { %v1208_v15 = vpop.permute.xlu0 %1207 }
 0xa53   :  { %v1212_v16 = vsel %vm532_vm6, %v4733_v29, %v1208_v15  ;;  %v3676_v15 = vpack.c.bf16 %v1474_v14, %v1473_v13 }
 0xa54   :  { %3389 = vmatmul.mubr.msk.f32.vlgmr.msra.gmra.mrb[8].mxu0 %vm348_vm4, %v1212_v16  ;;  %v1475_v16 = vld [vmem:[%s5219_s15 + $0x30] sm:$0xff] }
 0xa55   :  { %3671 = vmatpush3.bf16.msra.mxu0 %v3668_v8 }
 0xa56   :  { %3673 = vmatprep.subr.bf16.mxu0 %v3672_v12 }
 0xa59   :  { %3675 = vmatpush3.bf16.msra.mxu0 %v3672_v12 }
 0xa5a   :  { %3677 = vmatprep.subr.bf16.mxu0 %v3676_v15 }
 0xa5d   :  { %3679 = vmatpush3.bf16.msra.mxu0 %v3676_v15 }
 0xb27   :  { %v3390_v18 = vpop.f32.mrb[8].mxu0 }
 0xb28   :  { %v1306_v20 = vadd.f32 %v3390_v18, %v3072_v17  ;;  %v1300_v27 = vpop.f32.mrb[9].mxu0 }
 0xb29   :  { %v1301_v30 = vadd.f32 %v3072_v17, %v1300_v27  ;;  %v1476_v17 = vld [vmem:[%s5219_s15 + $0x38] sm:$0xff]  ;;  %v1478_v27 = vld [vmem:[%s5219_s15 + $0x48] sm:$0xff] }
 0xb2a   :  { %v1310_v23 = vadd.f32 %v1306_v20, %v4657_v22  ;;  %v3680_v18 = vpack.c.bf16 %v1476_v17, %v1475_v16  ;;  %v1477_v20 = vld [vmem:[%s5219_s15 + $0x40] sm:$0xff]  ;;  %v3086_v17 = vld [vmem:[%s5251_s29 + $0x98] sm:$0xff] }
 0xb2b   :  { %v1309_v21 = vadd.f32 %v1301_v30, %v4652_v19  ;;  %v1355_v19 = vld [vmem:[%s5217_s13] sm:$0xff]  ;;  %v1479_v30 = vld [vmem:[%s5219_s15 + $0x50] sm:$0xff] }
 0xb2c   :  { %v1316_v31 = vsel %vm348_vm4, %v1310_v23, 0.0  ;;  %v3652_v44 = vpack.c.bf16 %v1356_v43, %v1355_v19  ;;  %3681 = vmatprep.subr.bf16.mxu0 %v3680_v18 }
 0xb2d   :  { %1317 = vadd.xlane.f32.xlu0 %v1316_v31  ;;  %v1313_v32 = vsel %vm348_vm4, %v1309_v21, 0.0  ;;  %3683 = vmatpush3.bf16.msra.mxu0 %v3680_v18 }
 0xb2e   :  { %1314 = vadd.xlane.f32.xlu1 %v1313_v32  ;;  %3653 = vmatprep.subr.bf16.mxu1 %v3652_v44  ;;  %v1481_v32 = vld [vmem:[%s5219_s15 + $0x60] sm:$0xff] }
 0xb2f   :  { %3655 = vmatpush3.bf16.msra.mxu1 %v3652_v44 }
 0xb30   :  { %3657 = vmatprep.subr.bf16.mxu1 %v3656_v47 }
 0xb33   :  { %3659 = vmatpush3.bf16.msra.mxu1 %v3656_v47 }
 0xb34   :  { %3661 = vmatprep.subr.bf16.mxu1 %v3660_v51 }
 0xb37   :  { %3663 = vmatpush3.bf16.msra.mxu1 %v3660_v51 }
 0xb38   :  { %3665 = vmatprep.subr.bf16.mxu1 %v3664_v37 }
 0xb3b   :  { %3667 = vmatpush3.bf16.msra.mxu1 %v3664_v37 }
 0xbba   :  { %v1318_v29 = vpop.xlane.xlu0 %1317 }
 0xbbb   :  { %v1320_v34 = vmul.f32 0.015625, %v1318_v29  ;;  %v1315_v35 = vpop.xlane.xlu1 %1314  ;;  %v1482_v29 = vld [vmem:[%s5219_s15 + $0x68] sm:$0xff] }
 0xbbc   :  { %v1319_v36 = vmul.f32 0.015625, %v1315_v35  ;;  %v1483_v35 = vld [vmem:[%s5219_s15 + $0x70] sm:$0xff] }
 0xbbd   :  { %v1322_v38 = vsub.f32 %v1310_v23, %v1320_v34  ;;  %v3684_v23 = vpack.c.bf16 %v1478_v27, %v1477_v20  ;;  %v3692_v34 = vpack.c.bf16 %v1482_v29, %v1481_v32  ;;  %v3083_v20 = vld [vmem:[%s5251_s29 + $0x80] sm:$0xff]  ;;  %v3085_v27 = vld [vmem:[%s5251_s29 + $0x90] sm:$0xff] }
 0xbbe   :  { %v1321_v39 = vsub.f32 %v1309_v21, %v1319_v36  ;;  %v1480_v21 = vld [vmem:[%s5219_s15 + $0x58] sm:$0xff]  ;;  %v3087_v32 = vld [vmem:[%s5251_s29 + $0xa0] sm:$0xff]  ;;  %v3089_v29 = vld [vmem:[%s5251_s29 + $0xb0] sm:$0xff] }
 0xbbf   :  { %v1324_v40 = vmul.f32 %v1322_v38, %v1322_v38  ;;  %v3688_v31 = vpack.c.bf16 %v1480_v21, %v1479_v30  ;;  %3685 = vmatprep.subr.bf16.mxu0 %v3684_v23  ;;  %v1484_v36 = vld [vmem:[%s5219_s15 + $0x78] sm:$0xff]  ;;  %v3702_v30 = vpack.c.bf16 %v3085_v27, %v3083_v20 }
 0xbc0   :  { %v1323_v41 = vmul.f32 %v1321_v39, %v1321_v39  ;;  %3687 = vmatpush3.bf16.msra.mxu0 %v3684_v23  ;;  %v3088_v23 = vld [vmem:[%s5251_s29 + $0xa8] sm:$0xff]  ;;  %v3090_v21 = vld [vmem:[%s5251_s29 + $0xb8] sm:$0xff] }
 0xbc1   :  { %v1328_v42 = vsel %vm348_vm4, %v1324_v40, 0.0  ;;  %3689 = vmatprep.subr.bf16.mxu0 %v3688_v31 }
 0xbc2   :  { %1329 = vadd.xlane.f32.xlu1 %v1328_v42  ;;  %v1325_v22 = vsel %vm348_vm4, %v1323_v41, 0.0 }
 0xbc3   :  { %1326 = vadd.xlane.f32.xlu0 %v1325_v22 }
 0xbc4   :  { %3691 = vmatpush3.bf16.msra.mxu0 %v3688_v31  ;;  %v3704_v31 = vpack.c.bf16 %v3090_v21, %v3088_v23 }
 0xbc5   :  { %3693 = vmatprep.subr.bf16.mxu0 %v3692_v34 }
 0xbc8   :  { %3695 = vmatpush3.bf16.msra.mxu0 %v3692_v34  ;;  %v3706_v34 = vpack.c.bf16 %v3089_v29, %v3087_v32 }
 0xc4f   :  { %v1330_v54 = vpop.xlane.xlu1 %1329 }
 0xc50   :  { %v1332_v55 = vmul.f32 0.015625, %v1330_v54  ;;  %v1327_v57 = vpop.xlane.xlu0 %1326 }
 0xc51   :  { %v1331_v58 = vmul.f32 0.015625, %v1327_v57 }
 0xc52   :  { %v1334_v59 = vadd.f32 1e-12, %v1332_v55 }
 0xc53   :  { %v1333_v60 = vadd.f32 1e-12, %v1331_v58 }
 0xc54   :  { %3854 = vrsqrt.f32 %v1334_v59 }
 0xc55   :  { %3856 = vrsqrt.f32 %v1333_v60 }
 0xc5e   :  { %v3855_v61 = vpop.eup %3854 }
 0xc5f   :  { %v3857_v62 = vpop.eup %3856  ;;  %v1338_v63 = vmul.f32 %v3855_v61, %v1322_v38  ;;  %v3696_v38 = vpack.c.bf16 %v1484_v36, %v1483_v35  ;;  %v3080_v61 = vld [vmem:[#allocation14] ss:$0 sm:$0xff]  ;;  %v3094_v36 = vld [vmem:[%s5251_s29 + $0xd8] sm:$0xff] }
 0xc60   :  { %v1337_v0 = vmul.f32 %v3857_v62, %v1321_v39  ;;  %v3077_v39 = vld [vmem:[#allocation13] ss:$0 sm:$0xff] }
 0xc61   :  { %v1346_v2 = vmul.f32 %v3075_v33, %v1338_v63  ;;  %3697 = vmatprep.subr.bf16.mxu0 %v3696_v38  ;;  %v3092_v35 = vld [vmem:[%s5251_s29 + $0xc8] sm:$0xff] }
 0xc62   :  { %v1345_v3 = vmul.f32 %v3075_v33, %v1337_v0  ;;  %3699 = vmatpush3.bf16.msra.mxu0 %v3696_v38  ;;  %v3708_v38 = vpack.c.bf16 %v3094_v36, %v3092_v35 }
 0xc63   :  { %v4814_v5 = vadd.f32 %v3076_v1, %v1346_v2  ;;  %3460 = vmatprep.subr.mxu0 %v4219_v9 }
 0xc64   :  { %v4812_v4 = vadd.f32 %v3076_v1, %v1345_v3 }
 0xc66   :  { %3407 = vmatprep.mubr.msk.f32.mxu1 %vm348_vm4, %v4812_v4 }
 0xc67   :  { %3408 = vmatmul.mubr.msk.f32.vlgmr.msra.gmra.mrb[14].mxu1 %vm348_vm4, %v4814_v5 }
 0xc68   :  { %1713 = vmatprep.mubr.f32.mxu1 %v4219_v9 }
 0xd3a   :  { %v3409_v40 = vpop.f32.mrb[14].mxu1 }
 0xd3b   :  { %v1448_v41 = vadd.f32 %v3409_v40, %v3077_v39  ;;  %v1442_v42 = vpop.f32.mrb[15].mxu1  ;;  %v3093_v40 = vld [vmem:[%s5251_s29 + $0xd0] sm:$0xff] }
 0xd3c   :  { %v1443_v22 = vadd.f32 %v3077_v39, %v1442_v42  ;;  %v3091_v39 = vld [vmem:[%s5251_s29 + $0xc0] sm:$0xff]  ;;  %v3096_v42 = vld [vmem:[%s5251_s29 + $0xe8] sm:$0xff] }
 0xd3d   :  { %v1452_v19 = vmul.f32 %v1448_v41, %v1448_v41 }
 0xd3e   :  { %v1451_v43 = vmul.f32 %v1443_v22, %v1443_v22 }
 0xd3f   :  { %v1454_v44 = vmul.f32 %v1452_v19, %v1448_v41  ;;  %v3095_v19 = vld [vmem:[%s5251_s29 + $0xe0] sm:$0xff] }
 0xd40   :  { %v1453_v45 = vmul.f32 %v1451_v43, %v1443_v22 }
 0xd41   :  { %v1456_v46 = vmul.f32 0.044715, %v1454_v44  ;;  %v3097_v44 = vld [vmem:[%s5251_s29 + $0xf0] sm:$0xff] }
 0xd42   :  { %v1455_v47 = vmul.f32 0.044715, %v1453_v45  ;;  %v3714_v45 = vpack.c.bf16 %v3097_v44, %v3095_v19 }
 0xd43   :  { %v1458_v48 = vadd.f32 %v1456_v46, %v1448_v41 }
 0xd44   :  { %v1457_v49 = vadd.f32 %v1455_v47, %v1443_v22 }
 0xd45   :  { %v1460_v51 = vmul.f32 0.7978846, %v1458_v48 }
 0xd46   :  { %v1459_v52 = vmul.f32 0.7978846, %v1457_v49 }
 0xd47   :  { %3858 = vtanh.f32 %v1460_v51 }
 0xd48   :  { %3860 = vtanh.f32 %v1459_v52 }
 0xd51   :  { %v3859_v53 = vpop.eup %3858 }
 0xd52   :  { %v3861_v37 = vpop.eup %3860  ;;  %v1464_v54 = vadd.f32 1.0, %v3859_v53 }
 0xd53   :  { %v1463_v55 = vadd.f32 1.0, %v3861_v37 }
 0xd54   :  { %v1466_v57 = vmul.f32 0.5, %v1464_v54  ;;  %v3081_v54 = vld [vmem:[#allocation16] ss:$0 sm:$0xff] }
 0xd55   :  { %v1465_v58 = vmul.f32 0.5, %v1463_v55 }
 0xd56   :  { %v1468_v60 = vmul.f32 %v1466_v57, %v1448_v41  ;;  %v3710_v41 = vpack.c.bf16 %v3093_v40, %v3091_v39 }
 0xd57   :  { %v1467_v59 = vmul.f32 %v1465_v58, %v1443_v22  ;;  %v3098_v22 = vld [vmem:[%s5251_s29 + $0xf8] sm:$0xff]  ;;  %v3082_v58 = vld [vmem:[#allocation17] ss:$0 sm:$0xff] }
 0xd58   :  { %v3712_v43 = vpack.c.bf16 %v3098_v22, %v3096_v42 }
 0xd59   :  { %3442 = vmatprep.mubr.f32.mxu0 %v1467_v59 }
 0xd5a   :  { %3443 = vmatmul.mubr.f32.vlgmr.msra.gmra.mrb[10].mxu0 %v1468_v60 }
 0xd5b   :  { %3462 = vmatprep.mubr.msk.f32.mxu0 %vm4220_vm5, %v4219_v9 }
 0xe2d   :  { %v3444_v33 = vpop.f32.mrb[10].mxu0 }
 0xe2e   :  { %v1564_v62 = vadd.f32 %v3444_v33, %v3080_v61  ;;  %v1558_v63 = vpop.f32.mrb[11].mxu0 }
 0xe2f   :  { %v1559_v0 = vadd.f32 %v3080_v61, %v1558_v63 }
 0xe30   :  { %v1568_v1 = vadd.f32 %v1564_v62, %v4814_v5  ;;  %v1631_v62 = vld [vmem:[#allocation8 + $0x2] sm:$0x3] }
 0xe31   :  { %v1567_v2 = vadd.f32 %v1559_v0, %v4812_v4  ;;  %v3084_v4 = vld [vmem:[%s5251_s29 + $0x88] sm:$0xff]  ;;  %v1636_v63 = vrot.slane %v1631_v62, %v4669_v26  ;;  %v1640_v0 = vrot.slane %v1631_v62, %v442_v28 }
 0xe32   :  { %v1574_v3 = vsel %vm348_vm4, %v1568_v1, 0.0  ;;  %v3700_v18 = vpack.c.bf16 %v3086_v17, %v3084_v4 }
 0xe33   :  { %1575 = vadd.xlane.f32.xlu1 %v1574_v3  ;;  %v1571_v6 = vsel %vm348_vm4, %v1567_v2, 0.0 }
 0xe34   :  { %1572 = vadd.xlane.f32.xlu0 %v1571_v6  ;;  %3701 = vmatprep.subr.bf16.mxu1 %v3700_v18 }
 0xe35   :  { %3703 = vmatpush1.bf16.msra.mxu1 %v3702_v30 }
 0xe36   :  { %3705 = vmatprep.subr.bf16.mxu1 %v3704_v31 }
 0xe39   :  { %3707 = vmatpush1.bf16.msra.mxu1 %v3706_v34 }
 0xe3a   :  { %3709 = vmatprep.subr.bf16.mxu1 %v3708_v38 }
 0xe3d   :  { %3711 = vmatpush1.bf16.msra.mxu1 %v3710_v41 }
 0xe3e   :  { %3713 = vmatprep.subr.bf16.mxu1 %v3712_v43 }
 0xe41   :  { %3715 = vmatpush1.bf16.msra.mxu1 %v3714_v45 }
 0xe42   :  { %3445 = vmatprep.subr.mxu1 %v4219_v9 }
 0xec0   :  { %v1576_v7 = vpop.xlane.xlu1 %1575 }
 0xec1   :  { %v1578_v8 = vmul.f32 0.015625, %v1576_v7  ;;  %v1573_v10 = vpop.xlane.xlu0 %1572 }
 0xec2   :  { %v1577_v11 = vmul.f32 0.015625, %v1573_v10 }
 0xec3   :  { %v1580_v12 = vsub.f32 %v1568_v1, %v1578_v8 }
 0xec4   :  { %v1579_v13 = vsub.f32 %v1567_v2, %v1577_v11 }
 0xec5   :  { %v1582_v14 = vmul.f32 %v1580_v12, %v1580_v12 }
 0xec6   :  { %v1581_v15 = vmul.f32 %v1579_v13, %v1579_v13 }
 0xec7   :  { %v1586_v16 = vsel %vm348_vm4, %v1582_v14, 0.0 }
 0xec8   :  { %1587 = vadd.xlane.f32.xlu1 %v1586_v16  ;;  %v1583_v5 = vsel %vm348_vm4, %v1581_v15, 0.0 }
 0xec9   :  { %1584 = vadd.xlane.f32.xlu0 %v1583_v5 }
 0xf55   :  { %v1588_v46 = vpop.xlane.xlu1 %1587 }
 0xf56   :  { %v1590_v47 = vmul.f32 0.015625, %v1588_v46  ;;  %v1585_v48 = vpop.xlane.xlu0 %1584 }
 0xf57   :  { %v1589_v49 = vmul.f32 0.015625, %v1585_v48 }
 0xf58   :  { %v1592_v51 = vadd.f32 1e-12, %v1590_v47 }
 0xf59   :  { %v1591_v52 = vadd.f32 1e-12, %v1589_v49 }
 0xf5a   :  { %3862 = vrsqrt.f32 %v1592_v51 }
 0xf5b   :  { %3864 = vrsqrt.f32 %v1591_v52 }
 0xf64   :  { %v3863_v53 = vpop.eup %3862 }
 0xf65   :  { %v3865_v37 = vpop.eup %3864  ;;  %v1596_v57 = vmul.f32 %v3863_v53, %v1580_v12 }
 0xf66   :  { %v1595_v55 = vmul.f32 %v3865_v37, %v1579_v13 }
 0xf67   :  { %v1604_v61 = vmul.f32 %v3081_v54, %v1596_v57 }
 0xf68   :  { %v1603_v59 = vmul.f32 %v3081_v54, %v1595_v55 }
 0xf69   :  { %v4932_v33 = vadd.f32 %v3082_v58, %v1604_v61 }
 0xf6a   :  { %v4927_v60 = vadd.f32 %v3082_v58, %v1603_v59 }
 0xf6c   :  { %3099 = vmatmul.mubr.msk.f32.vlgmr.msra.gmra.mrb[16].mxu1 %vm348_vm4, %v4927_v60 }
 0xf6d   :  { %1719 = vmatprep.mubr.f32.mxu1 %v4219_v9 }
 0xf70   :  { %3100 = vmatmul.mubr.msk.f32.gmra.mrb[18].mxu1 %vm348_vm4, %v4932_v33 }
 0xf71   :  { %3447 = vmatprep.mubr.msk.f32.mxu1 %vm4220_vm5, %v4219_v9 }
0x103f   :  { %v1715_v1 = vpop.f32.mrb[16].mxu1 }
0x1040   :  { %v1716_v2 = vadd.f32 %v1715_v1, %v1636_v63  ;;  %v1717_v3 = vpop.f32.mrb[17].mxu1 }
0x1041   :  { %v4941_v6 = vadd.f32 %v1717_v3, %v1640_v0 }
0x1042   :  { %1727 = vrot.lane.b32.xlu0 %v1716_v2, %s4221_s23 }
0x1043   :  { %v1721_v7 = vpop.f32.mrb[18].mxu1 }
0x1044   :  { %v1722_v8 = vadd.f32 %v1721_v7, %v1636_v63  ;;  %v1723_v10 = vpop.f32.mrb[19].mxu1 }
0x1045   :  { %v4944_v11 = vadd.f32 %v1723_v10, %v1640_v0 }
0x1046   :  { %1804 = vrot.lane.b32.xlu1 %v1722_v8, %s4221_s23 }
0x1047   :  { %3461 = vmatpush3.msra.mxu0 %v4944_v11 }
0x1048   :  { %3470 = vmatprep.subr.mxu0 %v4219_v9 }
0x10b4   :  { %v1728_v25 = vpop.permute.xlu0 %1727 }
0x10b5   :  { %3446 = vmatpush3.xpose.msk.msra.mxu1 %vm532_vm6, %v1728_v25 }
0x10b6   :  { %3450 = vmatprep.subr.mxu1 %v4219_v9 }
0x10b8   :  { %v1805_v26 = vpop.permute.xlu1 %1804  ;;  %3448 = vmatmul.mubr.msk.f32.vlgmr.msra.gmra.mrb[20].mxu1 %vm532_vm6, %v1716_v2 }
0x10b9   :  { %3451 = vmatpush3.xpose.msk.msra.mxu1 %vm532_vm6, %v1805_v26  ;;  %3452 = vmatprep.mubr.msk.f32.mxu1 %vm4220_vm5, %v4219_v9 }
0x10ba   :  { %3455 = vmatprep.subr.mxu1 %v4219_v9 }
0x10bc   :  { %3453 = vmatmul.mubr.msk.f32.vlgmr.msra.gmra.mrb[22].mxu1 %vm532_vm6, %v1722_v8 }
0x10bd   :  { %3456 = vmatpush3.msra.mxu1 %v4941_v6  ;;  %3457 = vmatprep.mubr.msk.f32.mxu1 %vm4220_vm5, %v4219_v9 }
0x10be   :  { %3465 = vmatprep.subr.mxu1 %v4219_v9 }
0x118b   :  { %v1799_v28 = vpop.f32.mrb[20].mxu1 }
0x118c   :  { %v1880_v12 = vmul.f32 0.17677669, %v1799_v28  ;;  %v3449_v13 = vpop.f32.mrb[21].mxu1 }
0x118e   :  { %v1882_v14 = vadd.f32 %v1880_v12, %v4700_v50 }
0x118f   :  { %v1876_v15 = vpop.f32.mrb[22].mxu1 }
0x1190   :  { %v1881_v16 = vmul.f32 0.17677669, %v1876_v15  ;;  %v3454_v5 = vpop.f32.mrb[23].mxu1  ;;  %v1884_v4 = vsel %vm698_vm7, %v1882_v14, -inf  ;;  %v3115_v15 = vld [vmem:[%s5213_s9 + $0x50] sm:$0xff] }
0x1191   :  { %1885 = vmax.xlane.f32.xlu1 %v1884_v4  ;;  %v3116_v5 = vld [vmem:[%s5213_s9 + $0x58] sm:$0xff] }
0x1192   :  { %v1883_v17 = vadd.f32 %v1881_v16, %v4704_v56  ;;  %v3720_v4 = vpack.c.bf16 %v3116_v5, %v3115_v15 }
0x1194   :  { %v1887_v18 = vsel %vm698_vm7, %v1883_v17, -inf }
0x1195   :  { %1888 = vmax.xlane.f32.xlu0 %v1887_v18  ;;  %v3118_v18 = vld [vmem:[%s5213_s9 + $0x68] sm:$0xff] }
0x11a2   :  { %2132 = vrot.lane.b32.xlu1 %v1722_v8, %s5253_s14 }
0x121e   :  { %v1886_v20 = vpop.xlane.xlu1 %1885 }
0x121f   :  { %v1890_v27 = vsub.f32 %v1882_v14, %v1886_v20 }
0x1221   :  { %v1892_v30 = vmul.f32 1.442695, %v1890_v27  ;;  %v3119_v27 = vld [vmem:[%s5213_s9 + $0x70] sm:$0xff] }
0x1222   :  { %v1889_v23 = vpop.xlane.xlu0 %1888  ;;  %v2133_v36 = vpop.permute.xlu1 %2132 }
0x1223   :  { %3866 = vpow2.f32 %v1892_v30  ;;  %v1891_v21 = vsub.f32 %v1883_v17, %v1889_v23  ;;  %v3117_v17 = vld [vmem:[%s5213_s9 + $0x60] sm:$0xff]  ;;  %v3120_v30 = vld [vmem:[%s5213_s9 + $0x78] sm:$0xff] }
0x1224   :  { %v3724_v20 = vpack.c.bf16 %v3118_v18, %v3117_v17  ;;  %v3728_v23 = vpack.c.bf16 %v3120_v30, %v3119_v27  ;;  %v3139_v17 = vld [vmem:[%s5219_s15 + $0x88] sm:$0xff]  ;;  %v3141_v27 = vld [vmem:[%s5219_s15 + $0x98] sm:$0xff] }
0x1225   :  { %v1894_v31 = vmul.f32 1.442695, %v1891_v21 }
0x1227   :  { %3868 = vpow2.f32 %v1894_v31 }
0x122d   :  { %v3867_v32 = vpop.eup %3866 }
0x122e   :  { %v1896_v29 = vsel %vm698_vm7, %v3867_v32, 0.0 }
0x122f   :  { %1897 = vadd.xlane.f32.xlu0 %v1896_v29 }
0x1231   :  { %v3869_v34 = vpop.eup %3868 }
0x1232   :  { %v1899_v35 = vsel %vm698_vm7, %v3869_v34, 0.0 }
0x1233   :  { %1900 = vadd.xlane.f32.xlu1 %v1899_v35 }
0x1244   :  { %2052 = vrot.lane.b32.xlu1 %v1716_v2, %s4223_s1 }
0x1245   :  { %2054 = vrot.lane.b32.xlu0 %v1716_v2, %s5253_s14 }
0x1249   :  { %2130 = vrot.lane.b32.xlu0 %v1722_v8, %s4223_s1 }
0x12bc   :  { %v1898_v38 = vpop.xlane.xlu0 %1897 }
0x12bd   :  { %3870 = vrcp.f32 %v1898_v38 }
0x12c0   :  { %v1901_v39 = vpop.xlane.xlu1 %1900  ;;  %v2055_v42 = vpop.permute.xlu0 %2054 }
0x12c1   :  { %3872 = vrcp.f32 %v1901_v39  ;;  %v3122_v39 = vld [vmem:[%s5214_s10 + $0x1] ss:$0 sm:$0xff] }
0x12c4   :  { %v2053_v43 = vpop.permute.xlu1 %2052  ;;  %v2131_v44 = vpop.permute.xlu0 %2130 }
0x12c7   :  { %v3871_v40 = vpop.eup %3870 }
0x12c8   :  { %v1904_v41 = vmul.f32 %v3871_v40, %v3867_v32 }
0x12ca   :  { %3458 = vmatmul.mubr.msk.f32.vlgmr.msra.gmra.mrb[24].mxu1 %vm698_vm7, %v1904_v41 }
0x12cb   :  { %v3873_v22 = vpop.eup %3872  ;;  %3466 = vmatpush3.xpose.msk.msra.mxu1 %vm532_vm6, %v2055_v42  ;;  %3467 = vmatprep.mubr.msk.f32.mxu1 %vm4220_vm5, %v4219_v9 }
0x12cc   :  { %v1905_v19 = vmul.f32 %v3873_v22, %v3869_v34  ;;  %3475 = vmatprep.subr.mxu1 %v4219_v9 }
0x12ce   :  { %3463 = vmatmul.mubr.msk.f32.vlgmr.msra.gmra.mrb[12].mxu0 %vm698_vm7, %v1905_v19  ;;  %3468 = vmatmul.mubr.msk.f32.vlgmr.msra.gmra.mrb[26].mxu1 %vm532_vm6, %v2053_v43 }
0x12cf   :  { %3471 = vmatpush3.xpose.msk.msra.mxu0 %vm532_vm6, %v2133_v36  ;;  %3472 = vmatprep.mubr.msk.f32.mxu0 %vm4220_vm5, %v4219_v9 }
0x12d0   :  { %3480 = vmatprep.subr.mxu0 %v4219_v9  ;;  %3477 = vmatprep.mubr.msk.f32.mxu1 %vm4220_vm5, %v4219_v9 }
0x12d2   :  { %3473 = vmatmul.mubr.msk.f32.vlgmr.msra.gmra.mrb[14].mxu0 %vm532_vm6, %v2131_v44 }
0x12d3   :  { %3482 = vmatprep.mubr.msk.f32.mxu0 %vm4220_vm5, %v4219_v9 }
0x139d   :  { %v4987_v45 = vpop.f32.mrb[24].mxu1 }
0x139e   :  { %v3459_v46 = vpop.f32.mrb[25].mxu1 }
0x13a1   :  { %v4989_v47 = vpop.f32.mrb[12].mxu0  ;;  %v2126_v48 = vpop.f32.mrb[26].mxu1 }
0x13a2   :  { %v2208_v49 = vmul.f32 0.17677669, %v2126_v48  ;;  %v3464_v51 = vpop.f32.mrb[13].mxu0  ;;  %v3469_v52 = vpop.f32.mrb[27].mxu1 }
0x13a4   :  { %v2210_v53 = vadd.f32 %v2208_v49, %v4700_v50 }
0x13a5   :  { %v2204_v37 = vpop.f32.mrb[14].mxu0 }
0x13a6   :  { %v2209_v54 = vmul.f32 0.17677669, %v2204_v37  ;;  %v3474_v55 = vpop.f32.mrb[15].mxu0  ;;  %v2212_v57 = vsel %vm698_vm7, %v2210_v53, -inf }
0x13a7   :  { %2213 = vmax.xlane.f32.xlu1 %v2212_v57  ;;  %v3128_v55 = vld [vmem:[%s5217_s13 + $0x48] sm:$0xff] }
0x13a8   :  { %v2211_v58 = vadd.f32 %v2209_v54, %v4704_v56 }
0x13aa   :  { %v2215_v59 = vsel %vm698_vm7, %v2211_v58, -inf }
0x13ab   :  { %2216 = vmax.xlane.f32.xlu0 %v2215_v59  ;;  %v3130_v59 = vld [vmem:[%s5217_s13 + $0x58] sm:$0xff] }
0x1434   :  { %v2214_v61 = vpop.xlane.xlu1 %2213 }
0x1435   :  { %v2218_v62 = vsub.f32 %v2210_v53, %v2214_v61 }
0x1437   :  { %v2220_v63 = vmul.f32 1.442695, %v2218_v62  ;;  %v3131_v62 = vld [vmem:[%s5217_s13 + $0x60] sm:$0xff] }
0x1438   :  { %v2217_v0 = vpop.xlane.xlu0 %2216 }
0x1439   :  { %3874 = vpow2.f32 %v2220_v63  ;;  %v2219_v1 = vsub.f32 %v2211_v58, %v2217_v0  ;;  %v3129_v58 = vld [vmem:[%s5217_s13 + $0x50] sm:$0xff]  ;;  %v3132_v63 = vld [vmem:[%s5217_s13 + $0x68] sm:$0xff] }
0x143a   :  { %v3736_v61 = vpack.c.bf16 %v3130_v59, %v3129_v58  ;;  %v3740_v0 = vpack.c.bf16 %v3132_v63, %v3131_v62 }
0x143b   :  { %v2222_v2 = vmul.f32 1.442695, %v2219_v1  ;;  %v3133_v1 = vld [vmem:[%s5217_s13 + $0x70] sm:$0xff] }
0x143d   :  { %3876 = vpow2.f32 %v2222_v2  ;;  %v3134_v2 = vld [vmem:[%s5217_s13 + $0x78] sm:$0xff] }
0x1443   :  { %v3875_v50 = vpop.eup %3874 }
0x1444   :  { %v2224_v3 = vsel %vm698_vm7, %v3875_v50, 0.0 }
0x1445   :  { %2225 = vadd.xlane.f32.xlu0 %v2224_v3 }
0x1447   :  { %v3877_v7 = vpop.eup %3876 }
0x1448   :  { %v2227_v8 = vsel %vm698_vm7, %v3877_v7, 0.0 }
0x1449   :  { %2228 = vadd.xlane.f32.xlu1 %v2227_v8 }
0x145a   :  { %2312 = vrot.lane.b32.xlu1 %v4944_v11, %s4223_s1  ;;  %v3114_v11 = vld [vmem:[%s5213_s9 + $0x48] sm:$0xff] }
0x145b   :  { %2235 = vrot.lane.b32.xlu0 %v4941_v6, %s4223_s1  ;;  %v3113_v6 = vld [vmem:[%s5213_s9 + $0x40] sm:$0xff] }
0x145c   :  { %v3716_v16 = vpack.c.bf16 %v3114_v11, %v3113_v6  ;;  %v3126_v6 = vld [vmem:[#allocation11 + $0x1] ss:$0 sm:$0xff] }
0x14d2   :  { %v2226_v56 = vpop.xlane.xlu0 %2225 }
0x14d3   :  { %3878 = vrcp.f32 %v2226_v56 }
0x14d6   :  { %v2236_v10 = vpop.permute.xlu0 %2235  ;;  %v2229_v25 = vpop.xlane.xlu1 %2228 }
0x14d7   :  { %3880 = vrcp.f32 %v2229_v25  ;;  %3476 = vmatpush3.msra.mxu1 %v2236_v10 }
0x14d8   :  { %3717 = vmatprep.subr.bf16.mxu1 %v3716_v16 }
0x14da   :  { %v2313_v26 = vpop.permute.xlu1 %2312 }
0x14db   :  { %3481 = vmatpush3.msra.mxu0 %v2313_v26 }
0x14dd   :  { %v3879_v28 = vpop.eup %3878 }
0x14de   :  { %v2232_v12 = vmul.f32 %v3879_v28, %v3875_v50  ;;  %v3744_v50 = vpack.c.bf16 %v3134_v2, %v3133_v1  ;;  %v3125_v28 = vld [vmem:[#allocation10 + $0x1] ss:$0 sm:$0xff] }
0x14e0   :  { %3478 = vmatmul.mubr.msk.f32.vlgmr.msra.gmra.mrb[28].mxu1 %vm698_vm7, %v2232_v12 }
0x14e1   :  { %v3881_v13 = vpop.eup %3880  ;;  %3719 = vmatpush3.bf16.msra.mxu1 %v3716_v16 }
0x14e2   :  { %v2233_v14 = vmul.f32 %v3881_v13, %v3877_v7  ;;  %3721 = vmatprep.subr.bf16.mxu1 %v3720_v4 }
0x14e4   :  { %3483 = vmatmul.mubr.msk.f32.vlgmr.msra.gmra.mrb[16].mxu0 %vm698_vm7, %v2233_v14 }
0x14e5   :  { %3723 = vmatpush3.bf16.msra.mxu1 %v3720_v4  ;;  %v3138_v4 = vld [vmem:[%s5219_s15 + $0x80] sm:$0xff] }
0x14e6   :  { %3725 = vmatprep.subr.bf16.mxu1 %v3724_v20  ;;  %v3748_v18 = vpack.c.bf16 %v3139_v17, %v3138_v4 }
0x14e9   :  { %3727 = vmatpush3.bf16.msra.mxu1 %v3724_v20  ;;  %v3140_v20 = vld [vmem:[%s5219_s15 + $0x90] sm:$0xff] }
0x14ea   :  { %3729 = vmatprep.subr.bf16.mxu1 %v3728_v23  ;;  %v3752_v30 = vpack.c.bf16 %v3141_v27, %v3140_v20 }
0x14ed   :  { %3731 = vmatpush3.bf16.msra.mxu1 %v3728_v23  ;;  %v3142_v23 = vld [vmem:[%s5219_s15 + $0xa0] sm:$0xff] }
0x14ee   :  { %3749 = vmatprep.subr.bf16.mxu1 %v3748_v18 }
0x15b3   :  { %v2307_v21 = vpop.f32.mrb[28].mxu1 }
0x15b4   :  { %2390 = vrot.lane.b32.xlu1 %v2307_v21, %s5253_s14  ;;  %v3479_v31 = vpop.f32.mrb[29].mxu1  ;;  %v3143_v21 = vld [vmem:[%s5219_s15 + $0xa8] sm:$0xff] }
0x15b5   :  { %v3756_v31 = vpack.c.bf16 %v3143_v21, %v3142_v23  ;;  %v4224_v21 = vmov 0.0|0.0  }
0x15b7   :  { %v2384_v32 = vpop.f32.mrb[16].mxu0 }
0x15b8   :  { %2392 = vrot.lane.b32.xlu0 %v2384_v32, %s5253_s14  ;;  %v3484_v29 = vpop.f32.mrb[17].mxu0  ;;  %v3144_v32 = vld [vmem:[%s5219_s15 + $0xb0] sm:$0xff] }
0x15b9   :  { %v3145_v29 = vld [vmem:[%s5219_s15 + $0xb8] sm:$0xff] }
0x1626   :  { %v2391_v34 = vpop.permute.xlu1 %2390 }
0x1627   :  { %v2396_v35 = vsel %vm532_vm6, %v4987_v45, %v2391_v34  ;;  %v3760_v34 = vpack.c.bf16 %v3145_v29, %v3144_v32  ;;  %v2811_v32 = vld [vmem:[%s5223_s19 + $0x18] sm:$0xff] }
0x1628   :  { %3501 = vmatprep.mubr.msk.f32.mxu1 %vm348_vm4, %v2396_v35  ;;  %v3146_v35 = vld [vmem:[%s5219_s15 + $0xc0] sm:$0xff] }
0x162a   :  { %v2393_v36 = vpop.permute.xlu0 %2392 }
0x162b   :  { %v2397_v38 = vsel %vm532_vm6, %v4989_v47, %v2393_v36  ;;  %v3147_v36 = vld [vmem:[%s5219_s15 + $0xc8] sm:$0xff] }
0x162c   :  { %3502 = vmatmul.mubr.msk.f32.vlgmr.msra.gmra.mrb[30].mxu1 %vm348_vm4, %v2397_v38  ;;  %v3148_v38 = vld [vmem:[%s5219_s15 + $0xd0] sm:$0xff] }
0x162d   :  { %3751 = vmatpush3.bf16.msra.mxu1 %v3748_v18 }
0x162e   :  { %3753 = vmatprep.subr.bf16.mxu1 %v3752_v30 }
0x1631   :  { %3755 = vmatpush3.bf16.msra.mxu1 %v3752_v30  ;;  %v2809_v30 = vld [vmem:[%s5223_s19 + $0x8] sm:$0xff] }
0x1632   :  { %3757 = vmatprep.subr.bf16.mxu1 %v3756_v31 }
0x1635   :  { %3759 = vmatpush3.bf16.msra.mxu1 %v3756_v31  ;;  %v2810_v31 = vld [vmem:[%s5223_s19 + $0x10] sm:$0xff] }
0x1636   :  { %3761 = vmatprep.subr.bf16.mxu1 %v3760_v34  ;;  %v3784_v29 = vpack.c.bf16 %v2811_v32, %v2810_v31 }
0x1639   :  { %3763 = vmatpush3.bf16.msra.mxu1 %v3760_v34  ;;  %v2812_v34 = vld [vmem:[%s5223_s19 + $0x20] sm:$0xff] }
0x16ff   :  { %v3503_v40 = vpop.f32.mrb[30].mxu1 }
0x1700   :  { %v2493_v41 = vadd.f32 %v3503_v40, %v3122_v39  ;;  %v2487_v42 = vpop.f32.mrb[31].mxu1  ;;  %v3149_v40 = vld [vmem:[%s5219_s15 + $0xd8] sm:$0xff] }
0x1701   :  { %v2488_v22 = vadd.f32 %v3122_v39, %v2487_v42  ;;  %v3764_v39 = vpack.c.bf16 %v3147_v36, %v3146_v35  ;;  %v3150_v42 = vld [vmem:[%s5219_s15 + $0xe0] sm:$0xff]  ;;  %v2813_v35 = vld [vmem:[%s5223_s19 + $0x28] sm:$0xff] }
0x1702   :  { %v2497_v19 = vadd.f32 %v2493_v41, %v4932_v33  ;;  %v3768_v41 = vpack.c.bf16 %v3149_v40, %v3148_v38  ;;  %v3787_v36 = vpack.c.bf16 %v2813_v35, %v2812_v34  ;;  %v2814_v38 = vld [vmem:[%s5223_s19 + $0x30] sm:$0xff] }
0x1703   :  { %v2496_v43 = vadd.f32 %v2488_v22, %v4927_v60  ;;  %v3127_v60 = vld [vmem:[%s5217_s13 + $0x40] sm:$0xff]  ;;  %3765 = vmatprep.subr.bf16.mxu1 %v3764_v39  ;;  %v3151_v22 = vld [vmem:[%s5219_s15 + $0xe8] sm:$0xff] }
0x1704   :  { %v2505_v44 = vsel %vm348_vm4, %v2497_v19, 0.0  ;;  %v3732_v57 = vpack.c.bf16 %v3128_v55, %v3127_v60  ;;  %3767 = vmatpush3.bf16.msra.mxu1 %v3764_v39  ;;  %v2815_v39 = vld [vmem:[%s5223_s19 + $0x38] sm:$0xff] }
0x1705   :  { %2506 = vadd.xlane.f32.xlu0 %v2505_v44  ;;  %v2502_v45 = vsel %vm348_vm4, %v2496_v43, 0.0  ;;  %3769 = vmatprep.subr.bf16.mxu1 %v3768_v41  ;;  %v3153_v44 = vld [vmem:[%s5219_s15 + $0xf8] sm:$0xff]  ;;  %v3790_v40 = vpack.c.bf16 %v2815_v39, %v2814_v38 }
0x1706   :  { %2503 = vadd.xlane.f32.xlu1 %v2502_v45  ;;  %3733 = vmatprep.subr.bf16.mxu0 %v3732_v57 }
0x1707   :  { %3735 = vmatpush3.bf16.msra.mxu0 %v3732_v57 }
0x1708   :  { %3737 = vmatprep.subr.bf16.mxu0 %v3736_v61  ;;  %3771 = vmatpush3.bf16.msra.mxu1 %v3768_v41 }
0x170b   :  { %3739 = vmatpush3.bf16.msra.mxu0 %v3736_v61 }
0x170c   :  { %3741 = vmatprep.subr.bf16.mxu0 %v3740_v0 }
0x170f   :  { %3743 = vmatpush3.bf16.msra.mxu0 %v3740_v0 }
0x1710   :  { %3745 = vmatprep.subr.bf16.mxu0 %v3744_v50 }
0x1713   :  { %3747 = vmatpush3.bf16.msra.mxu0 %v3744_v50 }
0x1714   :  { %3780 = vmatprep.subr.bf16.mxu0 %v4224_v21 }
0x1792   :  { %v2507_v46 = vpop.xlane.xlu0 %2506 }
0x1793   :  { %v2509_v47 = vmul.f32 0.015625, %v2507_v46  ;;  %v2504_v48 = vpop.xlane.xlu1 %2503  ;;  %v3135_v46 = vld [vmem:[#allocation13 + $0x1] ss:$0 sm:$0xff] }
0x1794   :  { %v2508_v49 = vmul.f32 0.015625, %v2504_v48 }
0x1795   :  { %v2511_v51 = vsub.f32 %v2497_v19, %v2509_v47  ;;  %v3772_v19 = vpack.c.bf16 %v3151_v22, %v3150_v42 }
0x1796   :  { %v2510_v52 = vsub.f32 %v2496_v43, %v2508_v49  ;;  %v3152_v43 = vld [vmem:[%s5219_s15 + $0xf0] sm:$0xff] }
0x1797   :  { %v2513_v53 = vmul.f32 %v2511_v51, %v2511_v51  ;;  %3773 = vmatprep.subr.bf16.mxu1 %v3772_v19  ;;  %v3776_v45 = vpack.c.bf16 %v3153_v44, %v3152_v43 }
0x1798   :  { %v2512_v37 = vmul.f32 %v2510_v52, %v2510_v52  ;;  %3775 = vmatpush3.bf16.msra.mxu1 %v3772_v19 }
0x1799   :  { %v2517_v54 = vsel %vm348_vm4, %v2513_v53, 0.0  ;;  %3777 = vmatprep.subr.bf16.mxu1 %v3776_v45 }
0x179a   :  { %2518 = vadd.xlane.f32.xlu1 %v2517_v54  ;;  %v2514_v33 = vsel %vm348_vm4, %v2512_v37, 0.0 }
0x179b   :  { %2515 = vadd.xlane.f32.xlu0 %v2514_v33 }
0x179c   :  { %3779 = vmatpush3.bf16.msra.mxu1 %v3776_v45 }
0x1827   :  { %v2519_v3 = vpop.xlane.xlu1 %2518 }
0x1828   :  { %v2521_v7 = vmul.f32 0.015625, %v2519_v3  ;;  %v2516_v8 = vpop.xlane.xlu0 %2515 }
0x1829   :  { %v2520_v56 = vmul.f32 0.015625, %v2516_v8 }
0x182a   :  { %v2523_v10 = vadd.f32 1e-12, %v2521_v7  ;;  %v3154_v7 = vld [vmem:[#allocation14 + $0x1] ss:$0 sm:$0xff] }
0x182b   :  { %v2522_v25 = vadd.f32 1e-12, %v2520_v56 }
0x182c   :  { %3882 = vrsqrt.f32 %v2523_v10 }
0x182d   :  { %3884 = vrsqrt.f32 %v2522_v25 }
0x1836   :  { %v3883_v26 = vpop.eup %3882 }
0x1837   :  { %v3885_v12 = vpop.eup %3884  ;;  %v2527_v13 = vmul.f32 %v3883_v26, %v2511_v51 }
0x1838   :  { %v2526_v14 = vmul.f32 %v3885_v12, %v2510_v52 }
0x1839   :  { %v2535_v11 = vmul.f32 %v3125_v28, %v2527_v13 }
0x183a   :  { %v2534_v15 = vmul.f32 %v3125_v28, %v2526_v14 }
0x183b   :  { %v5070_v5 = vadd.f32 %v3126_v6, %v2535_v11 }
0x183c   :  { %v5068_v16 = vadd.f32 %v3126_v6, %v2534_v15 }
0x183e   :  { %3520 = vmatprep.mubr.msk.f32.mxu0 %vm348_vm4, %v5068_v16 }
0x183f   :  { %3521 = vmatmul.mubr.msk.f32.vlgmr.msra.gmra.mrb[18].mxu0 %vm348_vm4, %v5070_v5 }
0x1840   :  { %3574 = vmatprep.mubr.msk.f32.mxu0 %vm4220_vm5, %v4219_v9 }
0x1912   :  { %v3522_v47 = vpop.f32.mrb[18].mxu0 }
0x1913   :  { %v2639_v48 = vadd.f32 %v3522_v47, %v3135_v46  ;;  %v2633_v49 = vpop.f32.mrb[19].mxu0 }
0x1914   :  { %v2634_v51 = vadd.f32 %v3135_v46, %v2633_v49  ;;  %v3155_v46 = vld [vmem:[#allocation16 + $0x1] ss:$0 sm:$0xff] }
0x1915   :  { %v2643_v52 = vmul.f32 %v2639_v48, %v2639_v48 }
0x1916   :  { %v2642_v53 = vmul.f32 %v2634_v51, %v2634_v51 }
0x1917   :  { %v2645_v37 = vmul.f32 %v2643_v52, %v2639_v48 }
0x1918   :  { %v2644_v54 = vmul.f32 %v2642_v53, %v2634_v51 }
0x1919   :  { %v2647_v33 = vmul.f32 0.044715, %v2645_v37  ;;  %v2901_v37 = vld [vmem:[%s5225_s21] sm:$0xff] }
0x191a   :  { %v2646_v60 = vmul.f32 0.044715, %v2644_v54  ;;  %v2902_v54 = vld [vmem:[%s5225_s21 + $0x8] sm:$0xff] }
0x191b   :  { %v2649_v55 = vadd.f32 %v2647_v33, %v2639_v48 }
0x191c   :  { %v2648_v57 = vadd.f32 %v2646_v60, %v2634_v51 }
0x191d   :  { %v2651_v58 = vmul.f32 0.7978846, %v2649_v55 }
0x191e   :  { %v2650_v59 = vmul.f32 0.7978846, %v2648_v57  ;;  %v3793_v57 = vpack.c.bf16 %v2902_v54, %v2901_v37 }
0x191f   :  { %3886 = vtanh.f32 %v2651_v58  ;;  %v2903_v58 = vld [vmem:[%s5225_s21 + $0x10] sm:$0xff] }
0x1920   :  { %3888 = vtanh.f32 %v2650_v59  ;;  %v2904_v59 = vld [vmem:[%s5225_s21 + $0x18] sm:$0xff] }
0x1929   :  { %v3887_v61 = vpop.eup %3886 }
0x192a   :  { %v3889_v62 = vpop.eup %3888  ;;  %v2655_v63 = vadd.f32 1.0, %v3887_v61 }
0x192b   :  { %v2654_v0 = vadd.f32 1.0, %v3889_v62  ;;  %v3796_v62 = vpack.c.bf16 %v2904_v59, %v2903_v58 }
0x192c   :  { %v2657_v1 = vmul.f32 0.5, %v2655_v63  ;;  %v2905_v63 = vld [vmem:[%s5225_s21 + $0x20] sm:$0xff] }
0x192d   :  { %v2656_v2 = vmul.f32 0.5, %v2654_v0  ;;  %v2906_v0 = vld [vmem:[%s5225_s21 + $0x28] sm:$0xff] }
0x192e   :  { %v2659_v3 = vmul.f32 %v2657_v1, %v2639_v48  ;;  %v3799_v1 = vpack.c.bf16 %v2906_v0, %v2905_v63 }
0x192f   :  { %v2658_v50 = vmul.f32 %v2656_v2, %v2634_v51  ;;  %v3156_v51 = vld [vmem:[#allocation17 + $0x1] ss:$0 sm:$0xff] }
0x1930   :  { %v2907_v2 = vld [vmem:[%s5225_s21 + $0x30] sm:$0xff] }
0x1931   :  { %3555 = vmatprep.mubr.f32.mxu1 %v2658_v50  ;;  %v2908_v50 = vld [vmem:[%s5225_s21 + $0x38] sm:$0xff]  ;;  %s4225_s21 = smov [#allocation22]  }
0x1932   :  { %3556 = vmatmul.mubr.f32.vlgmr.msra.gmra.mrb[32].mxu1 %v2659_v3  ;;  %v3802_v3 = vpack.c.bf16 %v2908_v50, %v2907_v2  ;;  %s3036_s16 = sshll.u32 %s4225_s21, 4  ;;  %s3037_s16 = int_to_ptr.vmem [resolvable:$true] %s3036_s16 }
0x1933   :  { %s4162_s9 = scalar_lea.vmem %s3037_s16, 16  ;;  %s4166_s27 = scalar_lea.vmem %s3037_s16, 32 }
0x1934   :  { %p4163_p12 = scmp.ne.s32.totalorder %s3037_s16, %s4162_s9  ;;  %p4167_p13 = scmp.lt.s32.totalorder %s3037_s16, %s3037_s16 }
0x1935   :  { %p4168_p0 = scmp.lt.s32.totalorder %s4166_s27, %s4162_s9 }
0x1937   :  { %p4169_p1 = por %p4168_p0, %p4167_p13 }
0x1939   :  { %p4170_p2 = pnand %p4169_p1, %p4163_p12 }
0x1a05   :  { %v3557_v8 = vpop.f32.mrb[32].mxu1 }
0x1a06   :  { %v2757_v56 = vadd.f32 %v3557_v8, %v3154_v7  ;;  %v2751_v10 = vpop.f32.mrb[33].mxu1  ;;  %v3157_v8 = vld [vmem:[#allocation19] ss:$0 sm:$0xff] }
0x1a07   :  { %v2752_v25 = vadd.f32 %v3154_v7, %v2751_v10  ;;  %v2989_v7 = vld [vmem:[%s5254_s2] sm:$0x3] }
0x1a08   :  { %v2761_v26 = vadd.f32 %v2757_v56, %v5070_v5 }
0x1a09   :  { %v2760_v28 = vadd.f32 %v2752_v25, %v5068_v16  ;;  %v2808_v16 = vld [vmem:[%s5223_s19] sm:$0xff] }
0x1a0a   :  { %v2769_v12 = vsel %vm348_vm4, %v2761_v26, 0.0  ;;  %v3781_v23 = vpack.c.bf16 %v2809_v30, %v2808_v16 }
0x1a0b   :  { %2770 = vadd.xlane.f32.xlu0 %v2769_v12  ;;  %v2766_v13 = vsel %vm348_vm4, %v2760_v28, 0.0 }
0x1a0c   :  { %2767 = vadd.xlane.f32.xlu1 %v2766_v13  ;;  %3782 = vmatpush3.bf16.msra.mxu0 %v3781_v23 }
0x1a0d   :  { %3783 = vmatprep.subr.bf16.mxu0 %v4224_v21 }
0x1a10   :  { %3785 = vmatpush3.bf16.msra.mxu0 %v3784_v29 }
0x1a11   :  { %3786 = vmatprep.subr.bf16.mxu0 %v4224_v21 }
0x1a14   :  { %3788 = vmatpush3.bf16.msra.mxu0 %v3787_v36 }
0x1a15   :  { %3789 = vmatprep.subr.bf16.mxu0 %v4224_v21 }
0x1a18   :  { %3791 = vmatpush3.bf16.msra.mxu0 %v3790_v40 }
0x1a19   :  { %3792 = vmatprep.subr.bf16.mxu0 %v4224_v21 }
0x1a98   :  { %v2771_v14 = vpop.xlane.xlu0 %2770 }
0x1a99   :  { %v2773_v6 = vmul.f32 0.015625, %v2771_v14  ;;  %v2768_v11 = vpop.xlane.xlu1 %2767 }
0x1a9a   :  { %v2772_v15 = vmul.f32 0.015625, %v2768_v11 }
0x1a9b   :  { %v2775_v4 = vsub.f32 %v2761_v26, %v2773_v6 }
0x1a9c   :  { %v2774_v17 = vsub.f32 %v2760_v28, %v2772_v15  ;;  %v3159_v28 = vld [vmem:[#allocation20] ss:$0 sm:$0xff] }
0x1a9d   :  { %v2777_v18 = vmul.f32 %v2775_v4, %v2775_v4 }
0x1a9e   :  { %v2776_v20 = vmul.f32 %v2774_v17, %v2774_v17 }
0x1a9f   :  { %v2781_v27 = vsel %vm348_vm4, %v2777_v18, 0.0 }
0x1aa0   :  { %2782 = vadd.xlane.f32.xlu0 %v2781_v27  ;;  %v2778_v5 = vsel %vm348_vm4, %v2776_v20, 0.0 }
0x1aa1   :  { %2779 = vadd.xlane.f32.xlu1 %v2778_v5 }
0x1ab2   :  { %2991 = vperm.xlu1 %3833, %v2989_v7  }
0x1b2d   :  { %v2783_v41 = vpop.xlane.xlu0 %2782 }
0x1b2e   :  { %v2785_v42 = vmul.f32 0.015625, %v2783_v41  ;;  %v2780_v22 = vpop.xlane.xlu1 %2779 }
0x1b2f   :  { %v2784_v19 = vmul.f32 0.015625, %v2780_v22 }
0x1b30   :  { %v2787_v43 = vadd.f32 1e-12, %v2785_v42 }
0x1b31   :  { %v2786_v44 = vadd.f32 1e-12, %v2784_v19 }
0x1b32   :  { %3890 = vrsqrt.f32 %v2787_v43 }
0x1b33   :  { %3892 = vrsqrt.f32 %v2786_v44 }
0x1b3c   :  { %v3891_v45 = vpop.eup %3890 }
0x1b3d   :  { %v3893_v47 = vpop.eup %3892  ;;  %v2791_v48 = vmul.f32 %v3891_v45, %v2775_v4 }
0x1b3e   :  { %v2790_v49 = vmul.f32 %v3893_v47, %v2774_v17  ;;  %v2992_v17 = vpop.permute.xlu1 %2991 }
0x1b3f   :  { %v2799_v52 = vmul.f32 %v3155_v46, %v2791_v48  ;;  %vm2993_vm10 = vcmp.eq.s32.totalorder %v4593_v24, %v2992_v17 }
0x1b40   :  { %v2798_v53 = vmul.f32 %v3155_v46, %v2790_v49  ;;  %v3161_v18 = vsel %vm2993_vm10, 1.0, %v4219_v9 }
0x1b41   :  { %v2807_v33 = vadd.f32 %v3156_v51, %v2799_v52 }
0x1b42   :  { %v2806_v60 = vadd.f32 %v3156_v51, %v2798_v53 }
0x1b43   :  { %v2825_v55 = vrot.slane %v2807_v33, 7 }
0x1b45   :  { %v2827_v61 = vsel %vm2826_vm8, %v2825_v55, %v2806_v60 }
0x1b46   :  { %3575 = vmatmul.mubr.msk.f32.vlgmr.msra.gmra.mrb[20].mxu0 %vm348_vm4, %v2827_v61 }
0x1b47   :  { %3794 = vmatpush3.bf16.msra.mxu0 %v3793_v57  ;;  %3593 = vmatprep.mubr.msk.f32.mxu0 %vm4220_vm5, %v4219_v9 }
0x1b48   :  { %3795 = vmatprep.subr.bf16.mxu0 %v4224_v21 }
0x1b4b   :  { %3797 = vmatpush3.bf16.msra.mxu0 %v3796_v62 }
0x1b4c   :  { %3798 = vmatprep.subr.bf16.mxu0 %v4224_v21 }
0x1b4f   :  { %3800 = vmatpush3.bf16.msra.mxu0 %v3799_v1 }
0x1b50   :  { %3801 = vmatprep.subr.bf16.mxu0 %v4224_v21 }
0x1b53   :  { %3803 = vmatpush3.bf16.msra.mxu0 %v3802_v3 }
0x1c19   :  { %v2896_v56 = vpop.f32.mrb[20].mxu0 }
0x1c1a   :  { %v2897_v10 = vadd.f32 %v3157_v8, %v2896_v56  ;;  %v3576_v25 = vpop.f32.mrb[21].mxu0 }
0x1c1c   :  { %v2900_v26 = vmax.f32 %v2897_v10, 0.0 }
0x1c1e   :  { %3594 = vmatmul.mubr.msk.f32.vlgmr.msra.gmra.mrb[22].mxu0 %vm348_vm4, %v2900_v26 }
0x1cf1   :  { %v2985_v12 = vpop.f32.mrb[22].mxu0 }
0x1cf2   :  { %v2986_v13 = vadd.f32 %v3159_v28, %v2985_v12  ;;  %v3595_v14 = vpop.f32.mrb[23].mxu0 }
0x1cf4   :  { %v2997_v6 = vsel %vm2996_vm9, %v2986_v13, -inf  ;;  %v3009_v5 = vmul.f32 %v3161_v18, %v2986_v13 }
0x1cf5   :  { %2998 = vmax.xlane.f32.xlu0 %v2997_v6 }
0x1cf6   :  { %v3010_v16 = vsel %vm2996_vm9, %v3009_v5, 0.0 }
0x1d82   :  { %v2999_v11 = vpop.xlane.xlu0 %2998 }
0x1d83   :  { %v3000_v15 = vsub.f32 %v2986_v13, %v2999_v11 }
0x1d85   :  { %v3001_v4 = vmul.f32 1.442695, %v3000_v15 }
0x1d87   :  { %3894 = vpow2.f32 %v3001_v4 }
0x1d91   :  { %v3895_v20 = vpop.eup %3894 }
0x1d92   :  { %v3003_v27 = vsel %vm2996_vm9, %v3895_v20, 0.0 }
0x1d93   :  { %3004 = vadd.xlane.f32.xlu0 %v3003_v27 }
0x1d97   :  { %3011 = vadd.xlane.f32.xlu0 %v3010_v16 }
0x1e20   :  { %v3005_v30 = vpop.xlane.xlu0 %3004 }
0x1e21   :  { %3896 = vlog2.f32 %v3005_v30 }
0x1e24   :  { %v3012_v32 = vpop.xlane.xlu0 %3011 }
0x1e2b   :  { %v3897_v23 = vpop.eup %3896 }
0x1e2c   :  { %v3007_v21 = vmul.f32 0.6931472, %v3897_v23 }
0x1e2e   :  { %v3008_v31 = vadd.f32 %v3007_v21, %v2999_v11 }
0x1e30   :  { %v3013_v29 = vsub.f32 %v3008_v31, %v3012_v32 }
0x1e32   :  { %v3015_v34 = vsel %vm3014_vm11, %v3013_v29, 0.0 }
0x1e33   :  { %3016 = vadd.xlane.f32.xlu0 %v3015_v34 }
0x1ec0   :  { %v3017_v24 = vpop.xlane.xlu0 %3016 }
0x1ec1   :  { %v3018_v9 = vrot.slane %v3017_v24, 4 }
0x1ec3   :  { %v3019_v35 = vadd.f32 %v3018_v9, %v3017_v24 }
0x1ec5   :  { %v3020_v36 = vrot.slane %v3019_v35, 2 }
0x1ec7   :  { %v3021_v38 = vadd.f32 %v3020_v36, %v3019_v35 }
0x1ec9   :  { %v3022_v39 = vrot.slane %v3021_v38, 1 }
0x1ecb   :  { %v3023_v40 = vadd.f32 %v3022_v39, %v3021_v38 }
0x1ecd   :  { %3804 = vpush %v3023_v40 }
0x1efe   :  { %s3805_s22 = spop %3804 }
0x1eff   :  { %v3025_v41 = vstv %s3805_s22 }
0x1f00   :  { %v3027_v42 = vmul.f32 0.5, %v3025_v41 }
0x1f02   :  { %3029 = vst.msk [vmem:[#allocation22] sm:$0x1] %vm3028_vm12, %v3027_v42 }
0x1f03   :  { %4173 = shalt.err (!%p4170_p2)
}
0x1f04   :  { %s5255_s30 = sld [smem:[#allocation39_spill]] }
0x1f0a   :  { %s4174_s12 = scalar_lea.hbm %s5255_s30, 16 }
0x1f0b   :  { %p4175_p3 = scmp.ne.s32.totalorder %s5255_s30, %s4174_s12  ;;  %p4178_p4 = scmp.lt.u32.totalorder %s4174_s12, %s5255_s30 }
0x1f0d   :  { %p4180_p5 = pnand %p4178_p4, %p4175_p3 }
0x1f0f   :  { %4183 = shalt.err (!%p4180_p5)
}
0x1f10   :  { %3039 = dma.vmem_to_hbm [thread:$0]  %s3037_s16, 16, %s5255_s30, [#allocation4]  }
0x1f11   :  { %4198 = dma.done.wait [#allocation4], 16  }
0x1f12   :  { %4199 = vsyncadd [#allocation4], 4294967280 }
0x1f13   :  { %3043 = vsyncpa [#allocation3], 1 }
0x1f14   :  { %3044 = vsyncpa [#allocation6], 1 }
0x1f15   :  { %3045 = vsyncpa [#allocation9], 1 }
0x1f16   :  { %3046 = vsyncpa [#allocation12], 1 }
0x1f17   :  { %3047 = vsyncpa [#allocation15], 1 }
0x1f18   :  { %3048 = vsyncpa [#allocation18], 1 }
0x1f19   :  { %3049 = vsyncpa [#allocation21], 1 }
0x1f1a   :  { %3050 = vsyncpa [#allocation4], 1 }

</bundles_post_ra>
